<compile_context>
chip_gen: v5e
topology: v5e:2x2
jax: 0.10.0
libtpu: 0.0.40
codegen_flags: <defaults>
</compile_context>

<pallas_src>
import jax
import jax.numpy as jnp
from jax import lax
from jax.experimental import pallas as pl
from jax.experimental.pallas import tpu as pltpu

# ---- model hyper-parameters (mirror the PyTorch module) ----
CHAR_EMBED_SIZE = 10
NUM_CHAR_EMBEDDING = 14
HIDDEN_SIZE1 = 100
HIDDEN_SIZE2 = 50

VP = 16       # NUM_CHAR_EMBEDDING (14) padded to a sublane-friendly size
HP = 128      # HIDDEN_SIZE1 padded to lane multiple
HP2 = 128     # HIDDEN_SIZE2 padded to lane multiple
OUTP = 128    # padded output lane width (true output is column 0)


def _sigmoid(x):
    # single-tanh sigmoid: one EUP transcendental per gate on every TPU generation
    return 0.5 * (jnp.tanh(0.5 * x) + 1.0)


def lstm_kernel(tok_ref, wrec_ref, whead_ref, bhead_ref, out_ref):
    """Embedding gather (one-hot matmul) -> LSTM recurrence -> fc -> relu -> fc2 -> sigmoid.

    tok_ref:   (BT, T)         int32  token ids for this batch tile
    wrec_ref:  (VP+HP, 4*HP)   bf16   rows [0:VP)   = emb @ W_ih_cat + (b_ih+b_hh) table
                                      rows [VP:)    = recurrent weights [i|f|g|o], zero-padded
    whead_ref: (HP+HP2, OUTP)  bf16   rows [0:HP)   = fc weights (zero-padded)
                                      rows [HP:)    = fc2 weights (only column 0 nonzero)
    bhead_ref: (2, OUTP)       f32    row 0 = fc bias (padded), row 1 = fc2 bias (padded)
    out_ref:   (BT, OUTP)      f32    sigmoid probs in column 0 (lane-dense store)

    Padding invariants (keep!): xtab / whh padded lanes are exactly zero so padded gate
    lanes stay at c=0, h=0; whead rows >= 100 (and >= 50 for fc2) are zero so padded
    lanes never reach output column 0.
    """
    bt, seq_len = tok_ref.shape
    tok = tok_ref[...]                                           # (bt, T) int32
    xtab = wrec_ref[0:VP, :]                                     # (VP, 4*HP) bf16
    lane_iota = lax.broadcasted_iota(jnp.int32, (bt, VP), 1)     # hoisted out of the loop

    h = jnp.zeros((bt, HP), jnp.bfloat16)
    c = jnp.zeros((bt, HP), jnp.float32)

    # Static Python unroll over time (T=8). The one-hot gather matmul has no dependence
    # on the carry, so the scheduler can overlap it with the previous step's EUP chain.
    for t in range(seq_len):
        onehot = (lane_iota == tok[:, t:t + 1]).astype(jnp.bfloat16)           # (bt, VP)
        xproj = jnp.dot(onehot, xtab, preferred_element_type=jnp.float32)      # (bt, 4*HP)
        # single fused gate matmul per step: (bt,HP) @ (HP,4*HP) bf16 -> f32 accum
        gates = xproj + jnp.dot(h, wrec_ref[VP:VP + HP, :],
                                preferred_element_type=jnp.float32)
        i_g = _sigmoid(gates[:, 0 * HP:1 * HP])   # input gate
        f_g = _sigmoid(gates[:, 1 * HP:2 * HP])   # forget gate
        g_g = jnp.tanh(gates[:, 2 * HP:3 * HP])   # cell candidate
        o_g = _sigmoid(gates[:, 3 * HP:4 * HP])   # output gate
        c = f_g * c + i_g * g_g
        h = (o_g * jnp.tanh(c)).astype(jnp.bfloat16)

    # fc -> relu -> fc2 -> sigmoid (bf16 matmul inputs, f32 accumulation; col 0 is real)
    b = bhead_ref[...]
    y = jnp.dot(h, whead_ref[0:HP, :], preferred_element_type=jnp.float32) + b[0:1, :]
    y = jnp.maximum(y, 0.0).astype(jnp.bfloat16)
    z = jnp.dot(y, whead_ref[HP:HP + HP2, :], preferred_element_type=jnp.float32) + b[1:2, :]
    out_ref[...] = _sigmoid(z)


def init_params(key, char_embed_size=CHAR_EMBED_SIZE,
                num_char_embedding=NUM_CHAR_EMBEDDING,
                hidden_size1=HIDDEN_SIZE1, hidden_size2=HIDDEN_SIZE2):
    """Torch-layout parameters (per-gate order [i, f, g, o]); b = b_ih + b_hh."""
    ks = jax.random.split(key, 10)
    E, H, H2, V = char_embed_size, hidden_size1, hidden_size2, num_char_embedding

    def uniform(k, shape, bound):
        return jax.random.uniform(k, shape, jnp.float32, -bound, bound)

    lstm_bound = 1.0 / jnp.sqrt(H)
    fc_bound = 1.0 / jnp.sqrt(H)
    fc2_bound = 1.0 / jnp.sqrt(H2)

    return {
        "emb": jax.random.normal(ks[0], (V, E), jnp.float32),
        "wih": uniform(ks[1], (4, E, H), lstm_bound),
        "whh": uniform(ks[2], (4, H, H), lstm_bound),
        "b": uniform(ks[3], (4, 1, H), lstm_bound) + uniform(ks[4], (4, 1, H), lstm_bound),
        "wfc": uniform(ks[5], (H, H2), fc_bound),
        "bfc": uniform(ks[6], (1, H2), fc_bound),
        "wfc2": uniform(ks[7], (H2, 1), fc2_bound),
        "bfc2": uniform(ks[8], (1, 1), fc2_bound),
    }


def pack_params(params):
    """Fuse gates, bake the input projection into a (V, 4*HP) token table, pad everything
    to lane-dense 128 widths, and consolidate into 3 operand slabs (done once, offline)."""
    V, E = params["emb"].shape
    H = params["whh"].shape[2]
    H2 = params["wfc"].shape[1]

    # recurrent slab: rows [0:VP) = per-token input projection (incl. biases),
    #                 rows [VP:VP+HP) = recurrent weights; all padding exactly zero.
    wrec = jnp.zeros((VP + HP, 4 * HP), jnp.float32)
    for g in range(4):
        proj = params["emb"] @ params["wih"][g] + params["b"][g]        # (V, H)
        wrec = wrec.at[:V, g * HP:g * HP + H].set(proj)
        wrec = wrec.at[VP:VP + H, g * HP:g * HP + H].set(params["whh"][g])

    # head weight slab: rows [0:HP) = fc, rows [HP:HP+HP2) = fc2 (col 0 real)
    whead = jnp.zeros((HP + HP2, OUTP), jnp.float32)
    whead = whead.at[:H, :H2].set(params["wfc"])
    whead = whead.at[HP:HP + H2, 0:1].set(params["wfc2"])

    # head bias slab (kept f32)
    bhead = jnp.zeros((2, OUTP), jnp.float32)
    bhead = bhead.at[0, :H2].set(params["bfc"][0])
    bhead = bhead.at[1, 0].set(params["bfc2"][0, 0])

    return {
        "wrec": wrec.astype(jnp.bfloat16),
        "whead": whead.astype(jnp.bfloat16),
        "bhead": bhead,
    }


def lstm_forward(tokens, packed):
    """tokens: (B, T) int32 in [0, NUM_CHAR_EMBEDDING). Returns (B, 1) float32 sigmoid probs."""
    B, T = tokens.shape
    # batch tile: 2 tiles of 16 at B=32 -> both v7x TensorCores; single tile otherwise
    BT = 16 if (B % 16 == 0) else B
    grid = (B // BT,)

    out_pad = pl.pallas_call(
        lstm_kernel,
        out_shape=jax.ShapeDtypeStruct((B, OUTP), jnp.float32),
        grid=grid,
        in_specs=[
            pl.BlockSpec((BT, T), lambda i: (i, 0)),                # tokens: per batch tile
            pl.BlockSpec((VP + HP, 4 * HP), lambda i: (0, 0)),      # recurrent slab (resident)
            pl.BlockSpec((HP + HP2, OUTP), lambda i: (0, 0)),       # head weight slab (resident)
            pl.BlockSpec((2, OUTP), lambda i: (0, 0)),              # head bias slab (resident)
        ],
        out_specs=pl.BlockSpec((BT, OUTP), lambda i: (i, 0)),
        compiler_params=pltpu.CompilerParams(
            dimension_semantics=("parallel",)),
    )(tokens, packed["wrec"], packed["whead"], packed["bhead"])
    return out_pad[:, :1]                                            # (B, 1)


def reference_forward(tokens, params):
    """Pure-JAX f32 reference matching the PyTorch module semantics."""
    emb = params["emb"][tokens]                                      # (B, T, E)
    B, T, _ = emb.shape
    H = params["whh"].shape[2]
    h = jnp.zeros((B, H), jnp.float32)
    c = jnp.zeros((B, H), jnp.float32)
    for t in range(T):
        x = emb[:, t, :]
        i = jax.nn.sigmoid(x @ params["wih"][0] + h @ params["whh"][0] + params["b"][0])
        f = jax.nn.sigmoid(x @ params["wih"][1] + h @ params["whh"][1] + params["b"][1])
        g = jnp.tanh(x @ params["wih"][2] + h @ params["whh"][2] + params["b"][2])
        o = jax.nn.sigmoid(x @ params["wih"][3] + h @ params["whh"][3] + params["b"][3])
        c = f * c + i * g
        h = o * jnp.tanh(c)
    y = jnp.maximum(h @ params["wfc"] + params["bfc"], 0.0)
    return jax.nn.sigmoid(y @ params["wfc2"] + params["bfc2"])


if __name__ == "__main__":
    key = jax.random.PRNGKey(0)
    k_tok, k_params = jax.random.split(key)

    B, T = 32, 8  # module batch_size=32, short character sequence
    tokens = jax.random.randint(k_tok, (B, T), 0, NUM_CHAR_EMBEDDING, dtype=jnp.int32)
    params = init_params(k_params)
    packed = pack_params(params)

    fwd = jax.jit(lstm_forward)
    out = fwd(tokens, packed)
    jax.block_until_ready(out)

    assert out.shape == (B, 1) and out.dtype == jnp.float32
    assert bool(jnp.all((out >= 0.0) & (out <= 1.0)))

    # bf16 recurrent weights / carries -> allow bf16-level divergence vs f32 reference
    ref = reference_forward(tokens, params)
    max_err = float(jnp.max(jnp.abs(out - ref)))
    assert max_err < 5e-2, f"mismatch vs f32 reference: {max_err}"

    print("KERNEL_OK")
</pallas_src>

<mosaic_0001>
module attributes {stable_mosaic.version = 11 : i64} {
  func.func @lstm_kernel(%arg0: i32, %arg1: memref<16x8xi32, #tpu.memory_space<vmem>>, %arg2: memref<144x512xbf16, #tpu.memory_space<vmem>>, %arg3: memref<256x128xbf16, #tpu.memory_space<vmem>>, %arg4: memref<2x128xf32, #tpu.memory_space<vmem>>, %arg5: memref<16x128xf32, #tpu.memory_space<vmem>>) attributes {dimension_semantics = [#tpu.dimension_semantics<parallel>], iteration_bounds = array<i64: 2>, scalar_prefetch = 0 : i64, scratch_operands = 0 : i64, tpu.core_type = #tpu.core_type<tc>, window_params = [{transform_indices = @transform_0, window_bounds = array<i64: 16, 8>}, {pipeline_mode = #tpu.pipeline_mode<synchronous>, transform_indices = @transform_1, window_bounds = array<i64: 144, 512>}, {pipeline_mode = #tpu.pipeline_mode<synchronous>, transform_indices = @transform_2, window_bounds = array<i64: 256, 128>}, {pipeline_mode = #tpu.pipeline_mode<synchronous>, transform_indices = @transform_3, window_bounds = array<i64: 2, 128>}, {transform_indices = @transform_4, window_bounds = array<i64: 16, 128>}]} {
    %c0 = arith.constant 0 : index
    %c0_0 = arith.constant 0 : index
    %0 = vector.load %arg1[%c0, %c0_0] : memref<16x8xi32, #tpu.memory_space<vmem>>, vector<16x8xi32>
    %c0_1 = arith.constant 0 : index
    %c0_2 = arith.constant 0 : index
    %1 = vector.load %arg2[%c0_1, %c0_2] : memref<144x512xbf16, #tpu.memory_space<vmem>>, vector<16x512xbf16>
    %2 = tpu.iota {dimensions = array<i32: 1>} : vector<16x16xi32>
    %cst = arith.constant 0.000000e+00 : bf16
    %3 = vector.broadcast %cst : bf16 to vector<16x128xbf16>
    %cst_3 = arith.constant 0.000000e+00 : f32
    %4 = vector.broadcast %cst_3 : f32 to vector<16x128xf32>
    %5 = vector.extract_strided_slice %0 {offsets = [0, 0], sizes = [16, 1], strides = [1, 1]} : vector<16x8xi32> to vector<16x1xi32>
    %6 = vector.broadcast %5 : vector<16x1xi32> to vector<16x16xi32>
    %7 = arith.cmpi eq, %2, %6 : vector<16x16xi32>
    %8 = arith.extui %7 : vector<16x16xi1> to vector<16x16xi32>
    %9 = arith.sitofp %8 : vector<16x16xi32> to vector<16x16xf32>
    %10 = arith.truncf %9 : vector<16x16xf32> to vector<16x16xbf16>
    %cst_4 = arith.constant dense<0.000000e+00> : vector<16x512xf32>
    %11 = tpu.matmul %10, %1, %cst_4 {dimension_numbers = #tpu.dot_dimension_numbers<[1], [0], [0], [1], [0, 0, 1, 1], [], []>} : vector<16x16xbf16>, vector<16x512xbf16>, vector<16x512xf32> -> vector<16x512xf32>
    %c16 = arith.constant 16 : index
    %c0_5 = arith.constant 0 : index
    %12 = vector.load %arg2[%c16, %c0_5] : memref<144x512xbf16, #tpu.memory_space<vmem>>, vector<128x512xbf16>
    %cst_6 = arith.constant dense<0.000000e+00> : vector<16x512xf32>
    %13 = tpu.matmul %3, %12, %cst_6 {dimension_numbers = #tpu.dot_dimension_numbers<[1], [0], [0], [1], [0, 0, 1, 1], [], []>} : vector<16x128xbf16>, vector<128x512xbf16>, vector<16x512xf32> -> vector<16x512xf32>
    %14 = arith.addf %11, %13 : vector<16x512xf32>
    %15 = vector.extract_strided_slice %14 {offsets = [0, 0], sizes = [16, 128], strides = [1, 1]} : vector<16x512xf32> to vector<16x128xf32>
    %cst_7 = arith.constant 5.000000e-01 : f32
    %16 = vector.broadcast %cst_7 : f32 to vector<16x128xf32>
    %17 = arith.mulf %16, %15 : vector<16x128xf32>
    %18 = math.tanh %17 : vector<16x128xf32>
    %cst_8 = arith.constant 1.000000e+00 : f32
    %19 = vector.broadcast %cst_8 : f32 to vector<16x128xf32>
    %20 = arith.addf %18, %19 : vector<16x128xf32>
    %cst_9 = arith.constant 5.000000e-01 : f32
    %21 = vector.broadcast %cst_9 : f32 to vector<16x128xf32>
    %22 = arith.mulf %21, %20 : vector<16x128xf32>
    %23 = vector.extract_strided_slice %14 {offsets = [0, 128], sizes = [16, 128], strides = [1, 1]} : vector<16x512xf32> to vector<16x128xf32>
    %cst_10 = arith.constant 5.000000e-01 : f32
    %24 = vector.broadcast %cst_10 : f32 to vector<16x128xf32>
    %25 = arith.mulf %24, %23 : vector<16x128xf32>
    %26 = math.tanh %25 : vector<16x128xf32>
    %cst_11 = arith.constant 1.000000e+00 : f32
    %27 = vector.broadcast %cst_11 : f32 to vector<16x128xf32>
    %28 = arith.addf %26, %27 : vector<16x128xf32>
    %cst_12 = arith.constant 5.000000e-01 : f32
    %29 = vector.broadcast %cst_12 : f32 to vector<16x128xf32>
    %30 = arith.mulf %29, %28 : vector<16x128xf32>
    %31 = vector.extract_strided_slice %14 {offsets = [0, 256], sizes = [16, 128], strides = [1, 1]} : vector<16x512xf32> to vector<16x128xf32>
    %32 = math.tanh %31 : vector<16x128xf32>
    %33 = vector.extract_strided_slice %14 {offsets = [0, 384], sizes = [16, 128], strides = [1, 1]} : vector<16x512xf32> to vector<16x128xf32>
    %cst_13 = arith.constant 5.000000e-01 : f32
    %34 = vector.broadcast %cst_13 : f32 to vector<16x128xf32>
    %35 = arith.mulf %34, %33 : vector<16x128xf32>
    %36 = math.tanh %35 : vector<16x128xf32>
    %cst_14 = arith.constant 1.000000e+00 : f32
    %37 = vector.broadcast %cst_14 : f32 to vector<16x128xf32>
    %38 = arith.addf %36, %37 : vector<16x128xf32>
    %cst_15 = arith.constant 5.000000e-01 : f32
    %39 = vector.broadcast %cst_15 : f32 to vector<16x128xf32>
    %40 = arith.mulf %39, %38 : vector<16x128xf32>
    %41 = arith.mulf %30, %4 : vector<16x128xf32>
    %42 = arith.mulf %22, %32 : vector<16x128xf32>
    %43 = arith.addf %41, %42 : vector<16x128xf32>
    %44 = math.tanh %43 : vector<16x128xf32>
    %45 = arith.mulf %40, %44 : vector<16x128xf32>
    %46 = arith.truncf %45 : vector<16x128xf32> to vector<16x128xbf16>
    %47 = vector.extract_strided_slice %0 {offsets = [0, 1], sizes = [16, 1], strides = [1, 1]} : vector<16x8xi32> to vector<16x1xi32>
    %48 = vector.broadcast %47 : vector<16x1xi32> to vector<16x16xi32>
    %49 = arith.cmpi eq, %2, %48 : vector<16x16xi32>
    %50 = arith.extui %49 : vector<16x16xi1> to vector<16x16xi32>
    %51 = arith.sitofp %50 : vector<16x16xi32> to vector<16x16xf32>
    %52 = arith.truncf %51 : vector<16x16xf32> to vector<16x16xbf16>
    %cst_16 = arith.constant dense<0.000000e+00> : vector<16x512xf32>
    %53 = tpu.matmul %52, %1, %cst_16 {dimension_numbers = #tpu.dot_dimension_numbers<[1], [0], [0], [1], [0, 0, 1, 1], [], []>} : vector<16x16xbf16>, vector<16x512xbf16>, vector<16x512xf32> -> vector<16x512xf32>
    %c16_17 = arith.constant 16 : index
    %c0_18 = arith.constant 0 : index
    %54 = vector.load %arg2[%c16_17, %c0_18] : memref<144x512xbf16, #tpu.memory_space<vmem>>, vector<128x512xbf16>
    %cst_19 = arith.constant dense<0.000000e+00> : vector<16x512xf32>
    %55 = tpu.matmul %46, %54, %cst_19 {dimension_numbers = #tpu.dot_dimension_numbers<[1], [0], [0], [1], [0, 0, 1, 1], [], []>} : vector<16x128xbf16>, vector<128x512xbf16>, vector<16x512xf32> -> vector<16x512xf32>
    %56 = arith.addf %53, %55 : vector<16x512xf32>
    %57 = vector.extract_strided_slice %56 {offsets = [0, 0], sizes = [16, 128], strides = [1, 1]} : vector<16x512xf32> to vector<16x128xf32>
    %cst_20 = arith.constant 5.000000e-01 : f32
    %58 = vector.broadcast %cst_20 : f32 to vector<16x128xf32>
    %59 = arith.mulf %58, %57 : vector<16x128xf32>
    %60 = math.tanh %59 : vector<16x128xf32>
    %cst_21 = arith.constant 1.000000e+00 : f32
    %61 = vector.broadcast %cst_21 : f32 to vector<16x128xf32>
    %62 = arith.addf %60, %61 : vector<16x128xf32>
    %cst_22 = arith.constant 5.000000e-01 : f32
    %63 = vector.broadcast %cst_22 : f32 to vector<16x128xf32>
    %64 = arith.mulf %63, %62 : vector<16x128xf32>
    %65 = vector.extract_strided_slice %56 {offsets = [0, 128], sizes = [16, 128], strides = [1, 1]} : vector<16x512xf32> to vector<16x128xf32>
    %cst_23 = arith.constant 5.000000e-01 : f32
    %66 = vector.broadcast %cst_23 : f32 to vector<16x128xf32>
    %67 = arith.mulf %66, %65 : vector<16x128xf32>
    %68 = math.tanh %67 : vector<16x128xf32>
    %cst_24 = arith.constant 1.000000e+00 : f32
    %69 = vector.broadcast %cst_24 : f32 to vector<16x128xf32>
    %70 = arith.addf %68, %69 : vector<16x128xf32>
    %cst_25 = arith.constant 5.000000e-01 : f32
    %71 = vector.broadcast %cst_25 : f32 to vector<16x128xf32>
    %72 = arith.mulf %71, %70 : vector<16x128xf32>
    %73 = vector.extract_strided_slice %56 {offsets = [0, 256], sizes = [16, 128], strides = [1, 1]} : vector<16x512xf32> to vector<16x128xf32>
    %74 = math.tanh %73 : vector<16x128xf32>
    %75 = vector.extract_strided_slice %56 {offsets = [0, 384], sizes = [16, 128], strides = [1, 1]} : vector<16x512xf32> to vector<16x128xf32>
    %cst_26 = arith.constant 5.000000e-01 : f32
    %76 = vector.broadcast %cst_26 : f32 to vector<16x128xf32>
    %77 = arith.mulf %76, %75 : vector<16x128xf32>
    %78 = math.tanh %77 : vector<16x128xf32>
    %cst_27 = arith.constant 1.000000e+00 : f32
    %79 = vector.broadcast %cst_27 : f32 to vector<16x128xf32>
    %80 = arith.addf %78, %79 : vector<16x128xf32>
    %cst_28 = arith.constant 5.000000e-01 : f32
    %81 = vector.broadcast %cst_28 : f32 to vector<16x128xf32>
    %82 = arith.mulf %81, %80 : vector<16x128xf32>
    %83 = arith.mulf %72, %43 : vector<16x128xf32>
    %84 = arith.mulf %64, %74 : vector<16x128xf32>
    %85 = arith.addf %83, %84 : vector<16x128xf32>
    %86 = math.tanh %85 : vector<16x128xf32>
    %87 = arith.mulf %82, %86 : vector<16x128xf32>
    %88 = arith.truncf %87 : vector<16x128xf32> to vector<16x128xbf16>
    %89 = vector.extract_strided_slice %0 {offsets = [0, 2], sizes = [16, 1], strides = [1, 1]} : vector<16x8xi32> to vector<16x1xi32>
    %90 = vector.broadcast %89 : vector<16x1xi32> to vector<16x16xi32>
    %91 = arith.cmpi eq, %2, %90 : vector<16x16xi32>
    %92 = arith.extui %91 : vector<16x16xi1> to vector<16x16xi32>
    %93 = arith.sitofp %92 : vector<16x16xi32> to vector<16x16xf32>
    %94 = arith.truncf %93 : vector<16x16xf32> to vector<16x16xbf16>
    %cst_29 = arith.constant dense<0.000000e+00> : vector<16x512xf32>
    %95 = tpu.matmul %94, %1, %cst_29 {dimension_numbers = #tpu.dot_dimension_numbers<[1], [0], [0], [1], [0, 0, 1, 1], [], []>} : vector<16x16xbf16>, vector<16x512xbf16>, vector<16x512xf32> -> vector<16x512xf32>
    %c16_30 = arith.constant 16 : index
    %c0_31 = arith.constant 0 : index
    %96 = vector.load %arg2[%c16_30, %c0_31] : memref<144x512xbf16, #tpu.memory_space<vmem>>, vector<128x512xbf16>
    %cst_32 = arith.constant dense<0.000000e+00> : vector<16x512xf32>
    %97 = tpu.matmul %88, %96, %cst_32 {dimension_numbers = #tpu.dot_dimension_numbers<[1], [0], [0], [1], [0, 0, 1, 1], [], []>} : vector<16x128xbf16>, vector<128x512xbf16>, vector<16x512xf32> -> vector<16x512xf32>
    %98 = arith.addf %95, %97 : vector<16x512xf32>
    %99 = vector.extract_strided_slice %98 {offsets = [0, 0], sizes = [16, 128], strides = [1, 1]} : vector<16x512xf32> to vector<16x128xf32>
    %cst_33 = arith.constant 5.000000e-01 : f32
    %100 = vector.broadcast %cst_33 : f32 to vector<16x128xf32>
    %101 = arith.mulf %100, %99 : vector<16x128xf32>
    %102 = math.tanh %101 : vector<16x128xf32>
    %cst_34 = arith.constant 1.000000e+00 : f32
    %103 = vector.broadcast %cst_34 : f32 to vector<16x128xf32>
    %104 = arith.addf %102, %103 : vector<16x128xf32>
    %cst_35 = arith.constant 5.000000e-01 : f32
    %105 = vector.broadcast %cst_35 : f32 to vector<16x128xf32>
    %106 = arith.mulf %105, %104 : vector<16x128xf32>
    %107 = vector.extract_strided_slice %98 {offsets = [0, 128], sizes = [16, 128], strides = [1, 1]} : vector<16x512xf32> to vector<16x128xf32>
    %cst_36 = arith.constant 5.000000e-01 : f32
    %108 = vector.broadcast %cst_36 : f32 to vector<16x128xf32>
    %109 = arith.mulf %108, %107 : vector<16x128xf32>
    %110 = math.tanh %109 : vector<16x128xf32>
    %cst_37 = arith.constant 1.000000e+00 : f32
    %111 = vector.broadcast %cst_37 : f32 to vector<16x128xf32>
    %112 = arith.addf %110, %111 : vector<16x128xf32>
    %cst_38 = arith.constant 5.000000e-01 : f32
    %113 = vector.broadcast %cst_38 : f32 to vector<16x128xf32>
    %114 = arith.mulf %113, %112 : vector<16x128xf32>
    %115 = vector.extract_strided_slice %98 {offsets = [0, 256], sizes = [16, 128], strides = [1, 1]} : vector<16x512xf32> to vector<16x128xf32>
    %116 = math.tanh %115 : vector<16x128xf32>
    %117 = vector.extract_strided_slice %98 {offsets = [0, 384], sizes = [16, 128], strides = [1, 1]} : vector<16x512xf32> to vector<16x128xf32>
    %cst_39 = arith.constant 5.000000e-01 : f32
    %118 = vector.broadcast %cst_39 : f32 to vector<16x128xf32>
    %119 = arith.mulf %118, %117 : vector<16x128xf32>
    %120 = math.tanh %119 : vector<16x128xf32>
    %cst_40 = arith.constant 1.000000e+00 : f32
    %121 = vector.broadcast %cst_40 : f32 to vector<16x128xf32>
    %122 = arith.addf %120, %121 : vector<16x128xf32>
    %cst_41 = arith.constant 5.000000e-01 : f32
    %123 = vector.broadcast %cst_41 : f32 to vector<16x128xf32>
    %124 = arith.mulf %123, %122 : vector<16x128xf32>
    %125 = arith.mulf %114, %85 : vector<16x128xf32>
    %126 = arith.mulf %106, %116 : vector<16x128xf32>
    %127 = arith.addf %125, %126 : vector<16x128xf32>
    %128 = math.tanh %127 : vector<16x128xf32>
    %129 = arith.mulf %124, %128 : vector<16x128xf32>
    %130 = arith.truncf %129 : vector<16x128xf32> to vector<16x128xbf16>
    %131 = vector.extract_strided_slice %0 {offsets = [0, 3], sizes = [16, 1], strides = [1, 1]} : vector<16x8xi32> to vector<16x1xi32>
    %132 = vector.broadcast %131 : vector<16x1xi32> to vector<16x16xi32>
    %133 = arith.cmpi eq, %2, %132 : vector<16x16xi32>
    %134 = arith.extui %133 : vector<16x16xi1> to vector<16x16xi32>
    %135 = arith.sitofp %134 : vector<16x16xi32> to vector<16x16xf32>
    %136 = arith.truncf %135 : vector<16x16xf32> to vector<16x16xbf16>
    %cst_42 = arith.constant dense<0.000000e+00> : vector<16x512xf32>
    %137 = tpu.matmul %136, %1, %cst_42 {dimension_numbers = #tpu.dot_dimension_numbers<[1], [0], [0], [1], [0, 0, 1, 1], [], []>} : vector<16x16xbf16>, vector<16x512xbf16>, vector<16x512xf32> -> vector<16x512xf32>
    %c16_43 = arith.constant 16 : index
    %c0_44 = arith.constant 0 : index
    %138 = vector.load %arg2[%c16_43, %c0_44] : memref<144x512xbf16, #tpu.memory_space<vmem>>, vector<128x512xbf16>
    %cst_45 = arith.constant dense<0.000000e+00> : vector<16x512xf32>
    %139 = tpu.matmul %130, %138, %cst_45 {dimension_numbers = #tpu.dot_dimension_numbers<[1], [0], [0], [1], [0, 0, 1, 1], [], []>} : vector<16x128xbf16>, vector<128x512xbf16>, vector<16x512xf32> -> vector<16x512xf32>
    %140 = arith.addf %137, %139 : vector<16x512xf32>
    %141 = vector.extract_strided_slice %140 {offsets = [0, 0], sizes = [16, 128], strides = [1, 1]} : vector<16x512xf32> to vector<16x128xf32>
    %cst_46 = arith.constant 5.000000e-01 : f32
    %142 = vector.broadcast %cst_46 : f32 to vector<16x128xf32>
    %143 = arith.mulf %142, %141 : vector<16x128xf32>
    %144 = math.tanh %143 : vector<16x128xf32>
    %cst_47 = arith.constant 1.000000e+00 : f32
    %145 = vector.broadcast %cst_47 : f32 to vector<16x128xf32>
    %146 = arith.addf %144, %145 : vector<16x128xf32>
    %cst_48 = arith.constant 5.000000e-01 : f32
    %147 = vector.broadcast %cst_48 : f32 to vector<16x128xf32>
    %148 = arith.mulf %147, %146 : vector<16x128xf32>
    %149 = vector.extract_strided_slice %140 {offsets = [0, 128], sizes = [16, 128], strides = [1, 1]} : vector<16x512xf32> to vector<16x128xf32>
    %cst_49 = arith.constant 5.000000e-01 : f32
    %150 = vector.broadcast %cst_49 : f32 to vector<16x128xf32>
    %151 = arith.mulf %150, %149 : vector<16x128xf32>
    %152 = math.tanh %151 : vector<16x128xf32>
    %cst_50 = arith.constant 1.000000e+00 : f32
    %153 = vector.broadcast %cst_50 : f32 to vector<16x128xf32>
    %154 = arith.addf %152, %153 : vector<16x128xf32>
    %cst_51 = arith.constant 5.000000e-01 : f32
    %155 = vector.broadcast %cst_51 : f32 to vector<16x128xf32>
    %156 = arith.mulf %155, %154 : vector<16x128xf32>
    %157 = vector.extract_strided_slice %140 {offsets = [0, 256], sizes = [16, 128], strides = [1, 1]} : vector<16x512xf32> to vector<16x128xf32>
    %158 = math.tanh %157 : vector<16x128xf32>
    %159 = vector.extract_strided_slice %140 {offsets = [0, 384], sizes = [16, 128], strides = [1, 1]} : vector<16x512xf32> to vector<16x128xf32>
    %cst_52 = arith.constant 5.000000e-01 : f32
    %160 = vector.broadcast %cst_52 : f32 to vector<16x128xf32>
    %161 = arith.mulf %160, %159 : vector<16x128xf32>
    %162 = math.tanh %161 : vector<16x128xf32>
    %cst_53 = arith.constant 1.000000e+00 : f32
    %163 = vector.broadcast %cst_53 : f32 to vector<16x128xf32>
    %164 = arith.addf %162, %163 : vector<16x128xf32>
    %cst_54 = arith.constant 5.000000e-01 : f32
    %165 = vector.broadcast %cst_54 : f32 to vector<16x128xf32>
    %166 = arith.mulf %165, %164 : vector<16x128xf32>
    %167 = arith.mulf %156, %127 : vector<16x128xf32>
    %168 = arith.mulf %148, %158 : vector<16x128xf32>
    %169 = arith.addf %167, %168 : vector<16x128xf32>
    %170 = math.tanh %169 : vector<16x128xf32>
    %171 = arith.mulf %166, %170 : vector<16x128xf32>
    %172 = arith.truncf %171 : vector<16x128xf32> to vector<16x128xbf16>
    %173 = vector.extract_strided_slice %0 {offsets = [0, 4], sizes = [16, 1], strides = [1, 1]} : vector<16x8xi32> to vector<16x1xi32>
    %174 = vector.broadcast %173 : vector<16x1xi32> to vector<16x16xi32>
    %175 = arith.cmpi eq, %2, %174 : vector<16x16xi32>
    %176 = arith.extui %175 : vector<16x16xi1> to vector<16x16xi32>
    %177 = arith.sitofp %176 : vector<16x16xi32> to vector<16x16xf32>
    %178 = arith.truncf %177 : vector<16x16xf32> to vector<16x16xbf16>
    %cst_55 = arith.constant dense<0.000000e+00> : vector<16x512xf32>
    %179 = tpu.matmul %178, %1, %cst_55 {dimension_numbers = #tpu.dot_dimension_numbers<[1], [0], [0], [1], [0, 0, 1, 1], [], []>} : vector<16x16xbf16>, vector<16x512xbf16>, vector<16x512xf32> -> vector<16x512xf32>
    %c16_56 = arith.constant 16 : index
    %c0_57 = arith.constant 0 : index
    %180 = vector.load %arg2[%c16_56, %c0_57] : memref<144x512xbf16, #tpu.memory_space<vmem>>, vector<128x512xbf16>
    %cst_58 = arith.constant dense<0.000000e+00> : vector<16x512xf32>
    %181 = tpu.matmul %172, %180, %cst_58 {dimension_numbers = #tpu.dot_dimension_numbers<[1], [0], [0], [1], [0, 0, 1, 1], [], []>} : vector<16x128xbf16>, vector<128x512xbf16>, vector<16x512xf32> -> vector<16x512xf32>
    %182 = arith.addf %179, %181 : vector<16x512xf32>
    %183 = vector.extract_strided_slice %182 {offsets = [0, 0], sizes = [16, 128], strides = [1, 1]} : vector<16x512xf32> to vector<16x128xf32>
    %cst_59 = arith.constant 5.000000e-01 : f32
    %184 = vector.broadcast %cst_59 : f32 to vector<16x128xf32>
    %185 = arith.mulf %184, %183 : vector<16x128xf32>
    %186 = math.tanh %185 : vector<16x128xf32>
    %cst_60 = arith.constant 1.000000e+00 : f32
    %187 = vector.broadcast %cst_60 : f32 to vector<16x128xf32>
    %188 = arith.addf %186, %187 : vector<16x128xf32>
    %cst_61 = arith.constant 5.000000e-01 : f32
    %189 = vector.broadcast %cst_61 : f32 to vector<16x128xf32>
    %190 = arith.mulf %189, %188 : vector<16x128xf32>
    %191 = vector.extract_strided_slice %182 {offsets = [0, 128], sizes = [16, 128], strides = [1, 1]} : vector<16x512xf32> to vector<16x128xf32>
    %cst_62 = arith.constant 5.000000e-01 : f32
    %192 = vector.broadcast %cst_62 : f32 to vector<16x128xf32>
    %193 = arith.mulf %192, %191 : vector<16x128xf32>
    %194 = math.tanh %193 : vector<16x128xf32>
    %cst_63 = arith.constant 1.000000e+00 : f32
    %195 = vector.broadcast %cst_63 : f32 to vector<16x128xf32>
    %196 = arith.addf %194, %195 : vector<16x128xf32>
    %cst_64 = arith.constant 5.000000e-01 : f32
    %197 = vector.broadcast %cst_64 : f32 to vector<16x128xf32>
    %198 = arith.mulf %197, %196 : vector<16x128xf32>
    %199 = vector.extract_strided_slice %182 {offsets = [0, 256], sizes = [16, 128], strides = [1, 1]} : vector<16x512xf32> to vector<16x128xf32>
    %200 = math.tanh %199 : vector<16x128xf32>
    %201 = vector.extract_strided_slice %182 {offsets = [0, 384], sizes = [16, 128], strides = [1, 1]} : vector<16x512xf32> to vector<16x128xf32>
    %cst_65 = arith.constant 5.000000e-01 : f32
    %202 = vector.broadcast %cst_65 : f32 to vector<16x128xf32>
    %203 = arith.mulf %202, %201 : vector<16x128xf32>
    %204 = math.tanh %203 : vector<16x128xf32>
    %cst_66 = arith.constant 1.000000e+00 : f32
    %205 = vector.broadcast %cst_66 : f32 to vector<16x128xf32>
    %206 = arith.addf %204, %205 : vector<16x128xf32>
    %cst_67 = arith.constant 5.000000e-01 : f32
    %207 = vector.broadcast %cst_67 : f32 to vector<16x128xf32>
    %208 = arith.mulf %207, %206 : vector<16x128xf32>
    %209 = arith.mulf %198, %169 : vector<16x128xf32>
    %210 = arith.mulf %190, %200 : vector<16x128xf32>
    %211 = arith.addf %209, %210 : vector<16x128xf32>
    %212 = math.tanh %211 : vector<16x128xf32>
    %213 = arith.mulf %208, %212 : vector<16x128xf32>
    %214 = arith.truncf %213 : vector<16x128xf32> to vector<16x128xbf16>
    %215 = vector.extract_strided_slice %0 {offsets = [0, 5], sizes = [16, 1], strides = [1, 1]} : vector<16x8xi32> to vector<16x1xi32>
    %216 = vector.broadcast %215 : vector<16x1xi32> to vector<16x16xi32>
    %217 = arith.cmpi eq, %2, %216 : vector<16x16xi32>
    %218 = arith.extui %217 : vector<16x16xi1> to vector<16x16xi32>
    %219 = arith.sitofp %218 : vector<16x16xi32> to vector<16x16xf32>
    %220 = arith.truncf %219 : vector<16x16xf32> to vector<16x16xbf16>
    %cst_68 = arith.constant dense<0.000000e+00> : vector<16x512xf32>
    %221 = tpu.matmul %220, %1, %cst_68 {dimension_numbers = #tpu.dot_dimension_numbers<[1], [0], [0], [1], [0, 0, 1, 1], [], []>} : vector<16x16xbf16>, vector<16x512xbf16>, vector<16x512xf32> -> vector<16x512xf32>
    %c16_69 = arith.constant 16 : index
    %c0_70 = arith.constant 0 : index
    %222 = vector.load %arg2[%c16_69, %c0_70] : memref<144x512xbf16, #tpu.memory_space<vmem>>, vector<128x512xbf16>
    %cst_71 = arith.constant dense<0.000000e+00> : vector<16x512xf32>
    %223 = tpu.matmul %214, %222, %cst_71 {dimension_numbers = #tpu.dot_dimension_numbers<[1], [0], [0], [1], [0, 0, 1, 1], [], []>} : vector<16x128xbf16>, vector<128x512xbf16>, vector<16x512xf32> -> vector<16x512xf32>
    %224 = arith.addf %221, %223 : vector<16x512xf32>
    %225 = vector.extract_strided_slice %224 {offsets = [0, 0], sizes = [16, 128], strides = [1, 1]} : vector<16x512xf32> to vector<16x128xf32>
    %cst_72 = arith.constant 5.000000e-01 : f32
    %226 = vector.broadcast %cst_72 : f32 to vector<16x128xf32>
    %227 = arith.mulf %226, %225 : vector<16x128xf32>
    %228 = math.tanh %227 : vector<16x128xf32>
    %cst_73 = arith.constant 1.000000e+00 : f32
    %229 = vector.broadcast %cst_73 : f32 to vector<16x128xf32>
    %230 = arith.addf %228, %229 : vector<16x128xf32>
    %cst_74 = arith.constant 5.000000e-01 : f32
    %231 = vector.broadcast %cst_74 : f32 to vector<16x128xf32>
    %232 = arith.mulf %231, %230 : vector<16x128xf32>
    %233 = vector.extract_strided_slice %224 {offsets = [0, 128], sizes = [16, 128], strides = [1, 1]} : vector<16x512xf32> to vector<16x128xf32>
    %cst_75 = arith.constant 5.000000e-01 : f32
    %234 = vector.broadcast %cst_75 : f32 to vector<16x128xf32>
    %235 = arith.mulf %234, %233 : vector<16x128xf32>
    %236 = math.tanh %235 : vector<16x128xf32>
    %cst_76 = arith.constant 1.000000e+00 : f32
    %237 = vector.broadcast %cst_76 : f32 to vector<16x128xf32>
    %238 = arith.addf %236, %237 : vector<16x128xf32>
    %cst_77 = arith.constant 5.000000e-01 : f32
    %239 = vector.broadcast %cst_77 : f32 to vector<16x128xf32>
    %240 = arith.mulf %239, %238 : vector<16x128xf32>
    %241 = vector.extract_strided_slice %224 {offsets = [0, 256], sizes = [16, 128], strides = [1, 1]} : vector<16x512xf32> to vector<16x128xf32>
    %242 = math.tanh %241 : vector<16x128xf32>
    %243 = vector.extract_strided_slice %224 {offsets = [0, 384], sizes = [16, 128], strides = [1, 1]} : vector<16x512xf32> to vector<16x128xf32>
    %cst_78 = arith.constant 5.000000e-01 : f32
    %244 = vector.broadcast %cst_78 : f32 to vector<16x128xf32>
    %245 = arith.mulf %244, %243 : vector<16x128xf32>
    %246 = math.tanh %245 : vector<16x128xf32>
    %cst_79 = arith.constant 1.000000e+00 : f32
    %247 = vector.broadcast %cst_79 : f32 to vector<16x128xf32>
    %248 = arith.addf %246, %247 : vector<16x128xf32>
    %cst_80 = arith.constant 5.000000e-01 : f32
    %249 = vector.broadcast %cst_80 : f32 to vector<16x128xf32>
    %250 = arith.mulf %249, %248 : vector<16x128xf32>
    %251 = arith.mulf %240, %211 : vector<16x128xf32>
    %252 = arith.mulf %232, %242 : vector<16x128xf32>
    %253 = arith.addf %251, %252 : vector<16x128xf32>
    %254 = math.tanh %253 : vector<16x128xf32>
    %255 = arith.mulf %250, %254 : vector<16x128xf32>
    %256 = arith.truncf %255 : vector<16x128xf32> to vector<16x128xbf16>
    %257 = vector.extract_strided_slice %0 {offsets = [0, 6], sizes = [16, 1], strides = [1, 1]} : vector<16x8xi32> to vector<16x1xi32>
    %258 = vector.broadcast %257 : vector<16x1xi32> to vector<16x16xi32>
    %259 = arith.cmpi eq, %2, %258 : vector<16x16xi32>
    %260 = arith.extui %259 : vector<16x16xi1> to vector<16x16xi32>
    %261 = arith.sitofp %260 : vector<16x16xi32> to vector<16x16xf32>
    %262 = arith.truncf %261 : vector<16x16xf32> to vector<16x16xbf16>
    %cst_81 = arith.constant dense<0.000000e+00> : vector<16x512xf32>
    %263 = tpu.matmul %262, %1, %cst_81 {dimension_numbers = #tpu.dot_dimension_numbers<[1], [0], [0], [1], [0, 0, 1, 1], [], []>} : vector<16x16xbf16>, vector<16x512xbf16>, vector<16x512xf32> -> vector<16x512xf32>
    %c16_82 = arith.constant 16 : index
    %c0_83 = arith.constant 0 : index
    %264 = vector.load %arg2[%c16_82, %c0_83] : memref<144x512xbf16, #tpu.memory_space<vmem>>, vector<128x512xbf16>
    %cst_84 = arith.constant dense<0.000000e+00> : vector<16x512xf32>
    %265 = tpu.matmul %256, %264, %cst_84 {dimension_numbers = #tpu.dot_dimension_numbers<[1], [0], [0], [1], [0, 0, 1, 1], [], []>} : vector<16x128xbf16>, vector<128x512xbf16>, vector<16x512xf32> -> vector<16x512xf32>
    %266 = arith.addf %263, %265 : vector<16x512xf32>
    %267 = vector.extract_strided_slice %266 {offsets = [0, 0], sizes = [16, 128], strides = [1, 1]} : vector<16x512xf32> to vector<16x128xf32>
    %cst_85 = arith.constant 5.000000e-01 : f32
    %268 = vector.broadcast %cst_85 : f32 to vector<16x128xf32>
    %269 = arith.mulf %268, %267 : vector<16x128xf32>
    %270 = math.tanh %269 : vector<16x128xf32>
    %cst_86 = arith.constant 1.000000e+00 : f32
    %271 = vector.broadcast %cst_86 : f32 to vector<16x128xf32>
    %272 = arith.addf %270, %271 : vector<16x128xf32>
    %cst_87 = arith.constant 5.000000e-01 : f32
    %273 = vector.broadcast %cst_87 : f32 to vector<16x128xf32>
    %274 = arith.mulf %273, %272 : vector<16x128xf32>
    %275 = vector.extract_strided_slice %266 {offsets = [0, 128], sizes = [16, 128], strides = [1, 1]} : vector<16x512xf32> to vector<16x128xf32>
    %cst_88 = arith.constant 5.000000e-01 : f32
    %276 = vector.broadcast %cst_88 : f32 to vector<16x128xf32>
    %277 = arith.mulf %276, %275 : vector<16x128xf32>
    %278 = math.tanh %277 : vector<16x128xf32>
    %cst_89 = arith.constant 1.000000e+00 : f32
    %279 = vector.broadcast %cst_89 : f32 to vector<16x128xf32>
    %280 = arith.addf %278, %279 : vector<16x128xf32>
    %cst_90 = arith.constant 5.000000e-01 : f32
    %281 = vector.broadcast %cst_90 : f32 to vector<16x128xf32>
    %282 = arith.mulf %281, %280 : vector<16x128xf32>
    %283 = vector.extract_strided_slice %266 {offsets = [0, 256], sizes = [16, 128], strides = [1, 1]} : vector<16x512xf32> to vector<16x128xf32>
    %284 = math.tanh %283 : vector<16x128xf32>
    %285 = vector.extract_strided_slice %266 {offsets = [0, 384], sizes = [16, 128], strides = [1, 1]} : vector<16x512xf32> to vector<16x128xf32>
    %cst_91 = arith.constant 5.000000e-01 : f32
    %286 = vector.broadcast %cst_91 : f32 to vector<16x128xf32>
    %287 = arith.mulf %286, %285 : vector<16x128xf32>
    %288 = math.tanh %287 : vector<16x128xf32>
    %cst_92 = arith.constant 1.000000e+00 : f32
    %289 = vector.broadcast %cst_92 : f32 to vector<16x128xf32>
    %290 = arith.addf %288, %289 : vector<16x128xf32>
    %cst_93 = arith.constant 5.000000e-01 : f32
    %291 = vector.broadcast %cst_93 : f32 to vector<16x128xf32>
    %292 = arith.mulf %291, %290 : vector<16x128xf32>
    %293 = arith.mulf %282, %253 : vector<16x128xf32>
    %294 = arith.mulf %274, %284 : vector<16x128xf32>
    %295 = arith.addf %293, %294 : vector<16x128xf32>
    %296 = math.tanh %295 : vector<16x128xf32>
    %297 = arith.mulf %292, %296 : vector<16x128xf32>
    %298 = arith.truncf %297 : vector<16x128xf32> to vector<16x128xbf16>
    %299 = vector.extract_strided_slice %0 {offsets = [0, 7], sizes = [16, 1], strides = [1, 1]} : vector<16x8xi32> to vector<16x1xi32>
    %300 = vector.broadcast %299 : vector<16x1xi32> to vector<16x16xi32>
    %301 = arith.cmpi eq, %2, %300 : vector<16x16xi32>
    %302 = arith.extui %301 : vector<16x16xi1> to vector<16x16xi32>
    %303 = arith.sitofp %302 : vector<16x16xi32> to vector<16x16xf32>
    %304 = arith.truncf %303 : vector<16x16xf32> to vector<16x16xbf16>
    %cst_94 = arith.constant dense<0.000000e+00> : vector<16x512xf32>
    %305 = tpu.matmul %304, %1, %cst_94 {dimension_numbers = #tpu.dot_dimension_numbers<[1], [0], [0], [1], [0, 0, 1, 1], [], []>} : vector<16x16xbf16>, vector<16x512xbf16>, vector<16x512xf32> -> vector<16x512xf32>
    %c16_95 = arith.constant 16 : index
    %c0_96 = arith.constant 0 : index
    %306 = vector.load %arg2[%c16_95, %c0_96] : memref<144x512xbf16, #tpu.memory_space<vmem>>, vector<128x512xbf16>
    %cst_97 = arith.constant dense<0.000000e+00> : vector<16x512xf32>
    %307 = tpu.matmul %298, %306, %cst_97 {dimension_numbers = #tpu.dot_dimension_numbers<[1], [0], [0], [1], [0, 0, 1, 1], [], []>} : vector<16x128xbf16>, vector<128x512xbf16>, vector<16x512xf32> -> vector<16x512xf32>
    %308 = arith.addf %305, %307 : vector<16x512xf32>
    %309 = vector.extract_strided_slice %308 {offsets = [0, 0], sizes = [16, 128], strides = [1, 1]} : vector<16x512xf32> to vector<16x128xf32>
    %cst_98 = arith.constant 5.000000e-01 : f32
    %310 = vector.broadcast %cst_98 : f32 to vector<16x128xf32>
    %311 = arith.mulf %310, %309 : vector<16x128xf32>
    %312 = math.tanh %311 : vector<16x128xf32>
    %cst_99 = arith.constant 1.000000e+00 : f32
    %313 = vector.broadcast %cst_99 : f32 to vector<16x128xf32>
    %314 = arith.addf %312, %313 : vector<16x128xf32>
    %cst_100 = arith.constant 5.000000e-01 : f32
    %315 = vector.broadcast %cst_100 : f32 to vector<16x128xf32>
    %316 = arith.mulf %315, %314 : vector<16x128xf32>
    %317 = vector.extract_strided_slice %308 {offsets = [0, 128], sizes = [16, 128], strides = [1, 1]} : vector<16x512xf32> to vector<16x128xf32>
    %cst_101 = arith.constant 5.000000e-01 : f32
    %318 = vector.broadcast %cst_101 : f32 to vector<16x128xf32>
    %319 = arith.mulf %318, %317 : vector<16x128xf32>
    %320 = math.tanh %319 : vector<16x128xf32>
    %cst_102 = arith.constant 1.000000e+00 : f32
    %321 = vector.broadcast %cst_102 : f32 to vector<16x128xf32>
    %322 = arith.addf %320, %321 : vector<16x128xf32>
    %cst_103 = arith.constant 5.000000e-01 : f32
    %323 = vector.broadcast %cst_103 : f32 to vector<16x128xf32>
    %324 = arith.mulf %323, %322 : vector<16x128xf32>
    %325 = vector.extract_strided_slice %308 {offsets = [0, 256], sizes = [16, 128], strides = [1, 1]} : vector<16x512xf32> to vector<16x128xf32>
    %326 = math.tanh %325 : vector<16x128xf32>
    %327 = vector.extract_strided_slice %308 {offsets = [0, 384], sizes = [16, 128], strides = [1, 1]} : vector<16x512xf32> to vector<16x128xf32>
    %cst_104 = arith.constant 5.000000e-01 : f32
    %328 = vector.broadcast %cst_104 : f32 to vector<16x128xf32>
    %329 = arith.mulf %328, %327 : vector<16x128xf32>
    %330 = math.tanh %329 : vector<16x128xf32>
    %cst_105 = arith.constant 1.000000e+00 : f32
    %331 = vector.broadcast %cst_105 : f32 to vector<16x128xf32>
    %332 = arith.addf %330, %331 : vector<16x128xf32>
    %cst_106 = arith.constant 5.000000e-01 : f32
    %333 = vector.broadcast %cst_106 : f32 to vector<16x128xf32>
    %334 = arith.mulf %333, %332 : vector<16x128xf32>
    %335 = arith.mulf %324, %295 : vector<16x128xf32>
    %336 = arith.mulf %316, %326 : vector<16x128xf32>
    %337 = arith.addf %335, %336 : vector<16x128xf32>
    %338 = math.tanh %337 : vector<16x128xf32>
    %339 = arith.mulf %334, %338 : vector<16x128xf32>
    %340 = arith.truncf %339 : vector<16x128xf32> to vector<16x128xbf16>
    %c0_107 = arith.constant 0 : index
    %c0_108 = arith.constant 0 : index
    %341 = vector.load %arg4[%c0_107, %c0_108] : memref<2x128xf32, #tpu.memory_space<vmem>>, vector<2x128xf32>
    %c0_109 = arith.constant 0 : index
    %c0_110 = arith.constant 0 : index
    %342 = vector.load %arg3[%c0_109, %c0_110] : memref<256x128xbf16, #tpu.memory_space<vmem>>, vector<128x128xbf16>
    %cst_111 = arith.constant dense<0.000000e+00> : vector<16x128xf32>
    %343 = tpu.matmul %340, %342, %cst_111 {dimension_numbers = #tpu.dot_dimension_numbers<[1], [0], [0], [1], [0, 0, 1, 1], [], []>} : vector<16x128xbf16>, vector<128x128xbf16>, vector<16x128xf32> -> vector<16x128xf32>
    %344 = vector.extract_strided_slice %341 {offsets = [0, 0], sizes = [1, 128], strides = [1, 1]} : vector<2x128xf32> to vector<1x128xf32>
    %345 = vector.broadcast %344 : vector<1x128xf32> to vector<16x128xf32>
    %346 = arith.addf %343, %345 : vector<16x128xf32>
    %cst_112 = arith.constant 0.000000e+00 : f32
    %347 = vector.broadcast %cst_112 : f32 to vector<16x128xf32>
    %348 = arith.maximumf %346, %347 : vector<16x128xf32>
    %349 = arith.truncf %348 : vector<16x128xf32> to vector<16x128xbf16>
    %c128 = arith.constant 128 : index
    %c0_113 = arith.constant 0 : index
    %350 = vector.load %arg3[%c128, %c0_113] : memref<256x128xbf16, #tpu.memory_space<vmem>>, vector<128x128xbf16>
    %cst_114 = arith.constant dense<0.000000e+00> : vector<16x128xf32>
    %351 = tpu.matmul %349, %350, %cst_114 {dimension_numbers = #tpu.dot_dimension_numbers<[1], [0], [0], [1], [0, 0, 1, 1], [], []>} : vector<16x128xbf16>, vector<128x128xbf16>, vector<16x128xf32> -> vector<16x128xf32>
    %352 = vector.extract_strided_slice %341 {offsets = [1, 0], sizes = [1, 128], strides = [1, 1]} : vector<2x128xf32> to vector<1x128xf32>
    %353 = vector.broadcast %352 : vector<1x128xf32> to vector<16x128xf32>
    %354 = arith.addf %351, %353 : vector<16x128xf32>
    %cst_115 = arith.constant 5.000000e-01 : f32
    %355 = vector.broadcast %cst_115 : f32 to vector<16x128xf32>
    %356 = arith.mulf %355, %354 : vector<16x128xf32>
    %357 = math.tanh %356 : vector<16x128xf32>
    %cst_116 = arith.constant 1.000000e+00 : f32
    %358 = vector.broadcast %cst_116 : f32 to vector<16x128xf32>
    %359 = arith.addf %357, %358 : vector<16x128xf32>
    %cst_117 = arith.constant 5.000000e-01 : f32
    %360 = vector.broadcast %cst_117 : f32 to vector<16x128xf32>
    %361 = arith.mulf %360, %359 : vector<16x128xf32>
    %c0_118 = arith.constant 0 : index
    %c0_119 = arith.constant 0 : index
    %362 = vector.load %arg5[%c0_118, %c0_119] : memref<16x128xf32, #tpu.memory_space<vmem>>, vector<16x128xf32>
    tpu.vector_store %arg5[%c0_118, %c0_119], %361 {strides = array<i32>} : memref<16x128xf32, #tpu.memory_space<vmem>>, vector<16x128xf32>,
    return
  }
  func.func @transform_0(%arg0: i32) -> (i32, i32) {
    %c0_i32 = arith.constant 0 : i32
    %c0_i32_0 = arith.constant 0 : i32
    return %arg0, %c0_i32 : i32, i32
  }
  func.func @transform_1(%arg0: i32) -> (i32, i32) {
    %c0_i32 = arith.constant 0 : i32
    %c0_i32_0 = arith.constant 0 : i32
    %c0_i32_1 = arith.constant 0 : i32
    return %c0_i32, %c0_i32_0 : i32, i32
  }
  func.func @transform_2(%arg0: i32) -> (i32, i32) {
    %c0_i32 = arith.constant 0 : i32
    %c0_i32_0 = arith.constant 0 : i32
    %c0_i32_1 = arith.constant 0 : i32
    return %c0_i32, %c0_i32_0 : i32, i32
  }
  func.func @transform_3(%arg0: i32) -> (i32, i32) {
    %c0_i32 = arith.constant 0 : i32
    %c0_i32_0 = arith.constant 0 : i32
    %c0_i32_1 = arith.constant 0 : i32
    return %c0_i32, %c0_i32_0 : i32, i32
  }
  func.func @transform_4(%arg0: i32) -> (i32, i32) {
    %c0_i32 = arith.constant 0 : i32
    %c0_i32_0 = arith.constant 0 : i32
    return %arg0, %c0_i32 : i32, i32
  }
}

</mosaic_0001>

<bundles_post_ra>
// kernel: lstm_forward.1
= control target key start
LH: loop header
LB: loop body
LE: loop exit
PB: predicated region body
PF: predicated region fallthrough
CT: control target
= control target key end

     0   :  { %9 = vsyncpa [#allocation3], 0  ;;  %s3260_s0 = inlined_call_operand.vmem [shape: s32[32,8], index: 0, kind: input, shape index: {}]   ;;  %s3261_s1 = inlined_call_operand.hbm [shape: bf16[144,512], index: 1, kind: input, shape index: {}]   ;;  %s3262_s2 = inlined_call_operand.hbm [shape: bf16[256,128], index: 2, kind: input, shape index: {}]   ;;  %s3263_s3 = inlined_call_operand.vmem [shape: f32[2,128], index: 3, kind: input, shape index: {}]   ;;  %s3264_s4 = inlined_call_operand.vmem [shape: f32[32,128], index: 4, kind: output, shape index: {}]  }
   0x1   :  { %10 = vsyncpa [#allocation5], 0  ;;  %s2688_s15 = smov 0  }
   0x2 LB: > { %s147_s18 = sshll.u32 %s3261_s1, 4  ;;  %s2027_s19 = sadd.s32 4294967295, %s2646_s15   ;;  %s2646_s15 = sphi %s2688_s15, %s16_s15   ;;  %s148_s18 = int_to_ptr.hbm [resolvable:$true] %s147_s18 }
   0x3   : > { %p2029_p0 = scmp.ge.s32.totalorder %s2646_s15, 1  ;;  %p136_p1 = scmp.lt.s32.totalorder %s2646_s15, 3 }
   0x4   : > { %p2699_p2 = scmp.eq.s32.totalorder %s2027_s19, 0  ;;  %s2648_s22 = smov [#allocation2]  }
   0x5   : > { %p2703_p3 = pnand %p2029_p0, %p136_p1  ;;  %s149_s23 = sshll.u32 %s2648_s22, 4  ;;  %s150_s23 = int_to_ptr.vmem [resolvable:$true] %s149_s23 }
   0x6   : > { %s161_s26 = sshll.u32 %s3262_s2, 4  ;;  %s2649_s27 = smov [#allocation4]   ;;  %s162_s26 = int_to_ptr.hbm [resolvable:$true] %s161_s26 }
   0x7   : > { %p2358_p4 = pneg %p2703_p3  ;;  %s163_s28 = sshll.u32 %s2649_s27, 4  ;;  %s164_s28 = int_to_ptr.vmem [resolvable:$true] %s163_s28 }
   0x8   : > { %s2650_s29 = smov 256   ;;  %s2651_s30 = smov 16  }
   0x9   : > { %p2359_p5 = pnand %p2699_p2, %p2358_p4  ;;  %s2652_s5 = smov 64  }
   0xa   : > { %s2653_s6 = smov 4   ;;  %191 = sbr.rel (%p2703_p3) target bundleno = 1889 (0x761), region = 36 }
   0xb   : > { %2361 = dma.hbm_to_vmem [thread:$0]  (!%p2359_p5), %s148_s18, 4608, %s150_s23, [#allocation3], %s2650_s29, %s2650_s29, %s2651_s30  }
   0xc   : > { %2364 = dma.hbm_to_vmem [thread:$0]  (!%p2359_p5), %s162_s26, 2048, %s164_s28, [#allocation5], %s2652_s5, %s2652_s5, %s2653_s6  }
   0xf   : > { %2637 = dma.done.wait (%p2699_p2), [#allocation3], 4608  }
  0x10   : > { %2639 = vsyncadd (%p2699_p2), [#allocation3], 4294962688 }
  0x11   : > { %2641 = dma.done.wait (%p2699_p2), [#allocation5], 2048  }
  0x12   : > { %2643 = vsyncadd (%p2699_p2), [#allocation5], 4294965248  ;;  %s2036_s7 = sshll.u32 %s2027_s19, 1  ;;  %v2654_v0 = vmov 0   ;;  %v2164_v2 = vld [vmem:[#allocation2 + $0x108] sm:$0xf] }
  0x13   : > { %2392 = vset.pattern.permute.xlu0 %v2654_v0  ;;  %p224_p6 = scmp.lt.s32.totalorder %s2036_s7, 3  ;;  %v2333_v3 = vld [vmem:[#allocation2 + $0x114] sm:$0xf0]  ;;  %v2148_v4 = vld [vmem:[#allocation2 + $0xe8] sm:$0xf]  ;;  %vm525_vm2 = vcmask 130048  }
  0x14   : > { %v2329_v5 = vld [vmem:[#allocation2 + $0xf4] sm:$0xf0]  ;;  %v2739_v6 = vor.u32 %v2333_v3, %v2164_v2  ;;  %v2331_v7 = vld [vmem:[#allocation2 + $0x10c] sm:$0xf]  ;;  %v2166_v8 = vld [vmem:[#allocation2 + $0x118] sm:$0xf0] }
  0x15   : > { %s3311_s7 = smov (!%p224_p6, %s2036_s7), 3  ;;  %v2741_v9 = vor.u32 %v2331_v7, %v2166_v8  ;;  %v2327_v10 = vld [vmem:[#allocation2 + $0xec] sm:$0xf]  ;;  %v2150_v11 = vld [vmem:[#allocation2 + $0xf8] sm:$0xf0]  ;;  %v2744_v12 = vor.u32 %v2329_v5, %v2148_v4 }
  0x16   : > { %s2037_s8 = sshll.u32 %s3311_s7, 3  ;;  %477 = vmatpush.bf16.msra.mxu2 %v2739_v6  ;;  %v2132_v13 = vld [vmem:[#allocation2 + $0xc8] sm:$0xf]  ;;  %v2325_v14 = vld [vmem:[#allocation2 + $0xd4] sm:$0xf0]  ;;  %v2747_v15 = vor.u32 %v2327_v10, %v2150_v11 }
  0x17   : > { %s2733_s11 = scalar_lea.vmem %s3260_s0, %s2037_s8  ;;  %491 = vmatpush.bf16.msra.mxu3 %v2741_v9  ;;  %v2323_v17 = vld [vmem:[#allocation2 + $0xcc] sm:$0xf]  ;;  %v2134_v18 = vld [vmem:[#allocation2 + $0xd8] sm:$0xf0]  ;;  %v2753_v19 = vor.u32 %v2325_v14, %v2132_v13  ;;  %v2116_v20 = vld [vmem:[#allocation2 + $0xa8] sm:$0xf]  ;;  %s233_s17 = scalar_lea.vmem %s3264_s4, %s2037_s8 }
  0x18   : > { %v2736_v1 = vld [vmem:[%s2733_s11] sm:$0xff]  ;;  %v2750_v16 = vld [vmem:[%s2733_s11 + $0x8] sm:$0xff]  ;;  %v2321_v21 = vld [vmem:[#allocation2 + $0xb4] sm:$0xf0]  ;;  %v2757_v22 = vor.u32 %v2323_v17, %v2134_v18 }
  0x19   : > { %245 = vperm.xlu0 %2392, %v2736_v1   ;;  %v2319_v23 = vld [vmem:[#allocation2 + $0xac] sm:$0xf]  ;;  %v2118_v24 = vld [vmem:[#allocation2 + $0xb8] sm:$0xf0]  ;;  %v2156_v25 = vld [vmem:[#allocation2 + $0x100] sm:$0xf]  ;;  %v2760_v29 = vor.u32 %v2321_v21, %v2116_v20 }
  0x1a   : > { %478 = vmatpush.bf16.msra.mxu2 %v2744_v12  ;;  %v2332_v26 = vld [vmem:[#allocation2 + $0x10c] sm:$0xf0]  ;;  %v2330_v27 = vld [vmem:[#allocation2 + $0x104] sm:$0xf]  ;;  %v2158_v28 = vld [vmem:[#allocation2 + $0x110] sm:$0xf0]  ;;  %v2767_v35 = vor.u32 %v2319_v23, %v2118_v24 }
  0x1b   : > { %492 = vmatpush.bf16.msra.mxu3 %v2747_v15  ;;  %v2100_v30 = vld [vmem:[#allocation2 + $0x88] sm:$0xf]  ;;  %v2317_v31 = vld [vmem:[#allocation2 + $0x94] sm:$0xf0]  ;;  %v2762_v32 = vor.u32 %v2332_v26, %v2156_v25  ;;  %v2764_v33 = vor.u32 %v2330_v27, %v2158_v28  ;;  %v2140_v34 = vld [vmem:[#allocation2 + $0xe0] sm:$0xf] }
  0x1c   : > { %v2328_v36 = vld [vmem:[#allocation2 + $0xec] sm:$0xf0]  ;;  %v2326_v37 = vld [vmem:[#allocation2 + $0xe4] sm:$0xf]  ;;  %v2142_v38 = vld [vmem:[#allocation2 + $0xf0] sm:$0xf0]  ;;  %v2776_v47 = vor.u32 %v2317_v31, %v2100_v30 }
  0x1d   : > { %v2315_v39 = vld [vmem:[#allocation2 + $0x8c] sm:$0xf]  ;;  %v2102_v40 = vld [vmem:[#allocation2 + $0x98] sm:$0xf0]  ;;  %449 = vmatpush.bf16.msra.mxu0 %v2762_v32  ;;  %463 = vmatpush.bf16.msra.mxu1 %v2764_v33  ;;  %v2771_v41 = vor.u32 %v2328_v36, %v2140_v34  ;;  %v2773_v42 = vor.u32 %v2326_v37, %v2142_v38  ;;  %v2124_v43 = vld [vmem:[#allocation2 + $0xc0] sm:$0xf] }
  0x1e   : > { %479 = vmatpush.bf16.msra.mxu2 %v2753_v19  ;;  %v2324_v44 = vld [vmem:[#allocation2 + $0xcc] sm:$0xf0]  ;;  %v2322_v45 = vld [vmem:[#allocation2 + $0xc4] sm:$0xf]  ;;  %v2126_v46 = vld [vmem:[#allocation2 + $0xd0] sm:$0xf0]  ;;  %v2779_v50 = vor.u32 %v2315_v39, %v2102_v40 }
  0x1f   : > { %493 = vmatpush.bf16.msra.mxu3 %v2757_v22  ;;  %v2084_v48 = vld [vmem:[#allocation2 + $0x68] sm:$0xf]  ;;  %v2313_v49 = vld [vmem:[#allocation2 + $0x74] sm:$0xf0]  ;;  %v2311_v51 = vld [vmem:[#allocation2 + $0x6c] sm:$0xf]  ;;  %v2783_v53 = vor.u32 %v2324_v44, %v2124_v43  ;;  %v2785_v54 = vor.u32 %v2322_v45, %v2126_v46 }
  0x20   : > { %v2086_v52 = vld [vmem:[#allocation2 + $0x78] sm:$0xf0]  ;;  %v2108_v55 = vld [vmem:[#allocation2 + $0xa0] sm:$0xf]  ;;  %v2320_v56 = vld [vmem:[#allocation2 + $0xac] sm:$0xf0]  ;;  %v2788_v59 = vor.u32 %v2313_v49, %v2084_v48 }
  0x21   : > { %248 = vperm.xlu0 %2392, %v2750_v16   ;;  %450 = vmatpush.bf16.msra.mxu0 %v2771_v41  ;;  %v2318_v57 = vld [vmem:[#allocation2 + $0xa4] sm:$0xf]  ;;  %v2110_v58 = vld [vmem:[#allocation2 + $0xb0] sm:$0xf0]  ;;  %v2068_v60 = vld [vmem:[#allocation2 + $0x48] sm:$0xf]  ;;  %v2791_v62 = vor.u32 %v2311_v51, %v2086_v52  ;;  %v2795_v3 = vor.u32 %v2320_v56, %v2108_v55 }
  0x22   : > { %480 = vmatpush.bf16.msra.mxu2 %v2760_v29  ;;  %464 = vmatpush.bf16.msra.mxu1 %v2773_v42  ;;  %v2309_v61 = vld [vmem:[#allocation2 + $0x54] sm:$0xf0]  ;;  %v2307_v63 = vld [vmem:[#allocation2 + $0x4c] sm:$0xf]  ;;  %v2070_v2 = vld [vmem:[#allocation2 + $0x58] sm:$0xf0]  ;;  %v2797_v4 = vor.u32 %v2318_v57, %v2110_v58 }
  0x23   : > { %494 = vmatpush.bf16.msra.mxu3 %v2767_v35  ;;  %v2800_v5 = vor.u32 %v2309_v61, %v2068_v60  ;;  %v2052_v7 = vld [vmem:[#allocation2 + $0x28] sm:$0xf]  ;;  %v2305_v8 = vld [vmem:[#allocation2 + $0x34] sm:$0xf0]  ;;  %v2803_v10 = vor.u32 %v2307_v63, %v2070_v2  ;;  %v2303_v11 = vld [vmem:[#allocation2 + $0x2c] sm:$0xf] }
  0x24   : > { %v2054_v13 = vld [vmem:[#allocation2 + $0x38] sm:$0xf0]  ;;  %v2172_v14 = vld [vmem:[#allocation2] sm:$0xf]  ;;  %v2300_v17 = vld [vmem:[#allocation2 + $0xc] sm:$0xf0]  ;;  %v2808_v18 = vor.u32 %v2305_v8, %v2052_v7 }
  0x25   : > { %451 = vmatpush.bf16.msra.mxu0 %v2783_v53  ;;  %v2811_v20 = vor.u32 %v2303_v11, %v2054_v13  ;;  %v2813_v21 = vor.u32 %v2300_v17, %v2172_v14  ;;  %v2092_v23 = vld [vmem:[#allocation2 + $0x80] sm:$0xf]  ;;  %v2316_v24 = vld [vmem:[#allocation2 + $0x8c] sm:$0xf0]  ;;  %v2314_v25 = vld [vmem:[#allocation2 + $0x84] sm:$0xf]  ;;  %v242_v14 = vlaneseq }
  0x26   : > { %481 = vmatpush.bf16.msra.mxu2 %v2776_v47  ;;  %465 = vmatpush.bf16.msra.mxu1 %v2785_v54  ;;  %v2298_v26 = vld [vmem:[#allocation2 + $0x4] sm:$0xf]  ;;  %v2174_v27 = vld [vmem:[#allocation2 + $0x10] sm:$0xf0]  ;;  %v2820_v28 = vor.u32 %v2316_v24, %v2092_v23  ;;  %v2076_v36 = vld [vmem:[#allocation2 + $0x60] sm:$0xf] }
  0x27   : > { %495 = vmatpush.bf16.msra.mxu3 %v2779_v50  ;;  %3280 = vst [vmem:[#allocation8_spill] sm:$0xff] %v2811_v20  ;;  %v2094_v30 = vld [vmem:[#allocation2 + $0x90] sm:$0xf0]  ;;  %v2822_v31 = vor.u32 %v2298_v26, %v2174_v27  ;;  %v2312_v37 = vld [vmem:[#allocation2 + $0x6c] sm:$0xf0]  ;;  %v2655_v13 = vmov 1  }
  0x28   : > { %3281 = vst [vmem:[#allocation9_spill] sm:$0xff] %v2813_v21  ;;  %v2824_v34 = vor.u32 %v2314_v25, %v2094_v30  ;;  %v2310_v38 = vld [vmem:[#allocation2 + $0x64] sm:$0xf]  ;;  %v2827_v39 = vor.u32 %v2312_v37, %v2076_v36  ;;  %v2078_v40 = vld [vmem:[#allocation2 + $0x70] sm:$0xf0]  ;;  %2393 = vset.pattern.permute.xlu1 %v2655_v13  ;;  %v3265_v24 = vmov 0.0  }
  0x29   : > { %452 = vmatpush.bf16.msra.mxu0 %v2795_v3  ;;  %3282 = vst [vmem:[#allocation10_spill] sm:$0xff] %v2822_v31  ;;  %v2831_v43 = vor.u32 %v2310_v38, %v2078_v40  ;;  %v2060_v44 = vld [vmem:[#allocation2 + $0x40] sm:$0xf]  ;;  %v2308_v45 = vld [vmem:[#allocation2 + $0x4c] sm:$0xf0]  ;;  %623 = vperm.xlu1 %2393, %v2736_v1  }
  0x2a   : > { %482 = vmatpush.bf16.msra.mxu2 %v2788_v59  ;;  %466 = vmatpush.bf16.msra.mxu1 %v2797_v4  ;;  %v2306_v46 = vld [vmem:[#allocation2 + $0x44] sm:$0xf]  ;;  %v2835_v48 = vor.u32 %v2308_v45, %v2060_v44  ;;  %v2062_v49 = vld [vmem:[#allocation2 + $0x50] sm:$0xf0]  ;;  %v2180_v52 = vld [vmem:[#allocation2 + $0x8] sm:$0xf] }
  0x2b   : > { %496 = vmatpush.bf16.msra.mxu3 %v2791_v62  ;;  %v2837_v51 = vor.u32 %v2306_v46, %v2062_v49  ;;  %v2301_v55 = vld [vmem:[#allocation2 + $0x14] sm:$0xf0]  ;;  %v2044_v56 = vld [vmem:[#allocation2 + $0x20] sm:$0xf]  ;;  %v2304_v58 = vld [vmem:[#allocation2 + $0x2c] sm:$0xf0] }
  0x2c   : > { %v2841_v57 = vor.u32 %v2301_v55, %v2180_v52  ;;  %v2302_v60 = vld [vmem:[#allocation2 + $0x24] sm:$0xf]  ;;  %v2046_v61 = vld [vmem:[#allocation2 + $0x30] sm:$0xf0]  ;;  %v2843_v63 = vor.u32 %v2304_v58, %v2044_v56  ;;  %v2299_v7 = vld [vmem:[#allocation2 + $0xc] sm:$0xf] }
  0x2d   : > { %453 = vmatpush.bf16.msra.mxu0 %v2820_v28  ;;  %v2845_v2 = vor.u32 %v2302_v60, %v2046_v61  ;;  %v2182_v8 = vld [vmem:[#allocation2 + $0x18] sm:$0xf0] }
  0x2e   : > { %483 = vmatpush.bf16.msra.mxu2 %v2800_v5  ;;  %467 = vmatpush.bf16.msra.mxu1 %v2824_v34  ;;  %3283 = vst [vmem:[#allocation11_spill] sm:$0xff] %v2841_v57  ;;  %v2848_v11 = vor.u32 %v2299_v7, %v2182_v8 }
  0x2f   : > { %497 = vmatpush.bf16.msra.mxu3 %v2803_v10 }
  0x30   : > { %3284 = vst [vmem:[#allocation12_spill] sm:$0xff] %v2848_v11 }
  0x31   : > { %454 = vmatpush.bf16.msra.mxu0 %v2827_v39  ;;  %626 = vperm.xlu1 %2393, %v2750_v16  }
  0x32   : > { %484 = vmatpush.bf16.msra.mxu2 %v2808_v18  ;;  %468 = vmatpush.bf16.msra.mxu1 %v2831_v43 }
  0x33   : > { %498 = vmatpush.bf16.msra.mxu3 %v2811_v20 }
  0x35   : > { %485 = vmatmul.bf16.vlgmr.msra.gmra.mxu2 %v2654_v0  ;;  %455 = vmatpush.bf16.msra.mxu0 %v2835_v48 }
  0x36   : > { %536 = vmatpush.bf16.msrb.mxu2 %v2813_v21  ;;  %499 = vmatmul.bf16.vlgmr.msra.gmra.mxu3 %v2654_v0 }
  0x37   : > { %550 = vmatpush.bf16.msrb.mxu3 %v2822_v31  ;;  %469 = vmatpush.bf16.msra.mxu1 %v2837_v51 }
  0x39   : > { %456 = vmatpush.bf16.msra.mxu0 %v2843_v63 }
  0x3a   : > { %564 = vmatpush.bf16.msra.mxu2 %v2841_v57 }
  0x3b   : > { %470 = vmatpush.bf16.msra.mxu1 %v2845_v2  ;;  %578 = vmatpush.bf16.msra.mxu3 %v2848_v11 }
  0x3c   : > { %457 = vmatmul.bf16.vlgmr.msra.gmra.mxu0 %v2654_v0 }
  0x3d   : > { %635 = vmatpush.bf16.msrb.mxu0 %v2762_v32 }
  0x3e   : > { %471 = vmatmul.bf16.vlgmr.msra.gmra.mxu1 %v2654_v0  ;;  %v2865_v0 = vand.u32 127, %v242_v14 }
  0x3f   : > { %649 = vmatpush.bf16.msrb.mxu1 %v2764_v33 }
  0x41   : > { %636 = vmatpush.bf16.msrb.mxu0 %v2771_v41 }
  0x43   : > { %650 = vmatpush.bf16.msrb.mxu1 %v2773_v42 }
  0x45   : > { %637 = vmatpush.bf16.msrb.mxu0 %v2783_v53 }
  0x47   : > { %651 = vmatpush.bf16.msrb.mxu1 %v2785_v54 }
  0x49   : > { %638 = vmatpush.bf16.msrb.mxu0 %v2795_v3 }
  0x4b   : > { %652 = vmatpush.bf16.msrb.mxu1 %v2797_v4 }
  0x4d   : > { %639 = vmatpush.bf16.msrb.mxu0 %v2820_v28 }
  0x4f   : > { %653 = vmatpush.bf16.msrb.mxu1 %v2824_v34 }
  0x51   : > { %640 = vmatpush.bf16.msrb.mxu0 %v2827_v39 }
  0x53   : > { %654 = vmatpush.bf16.msrb.mxu1 %v2831_v43 }
  0x55   : > { %641 = vmatpush.bf16.msrb.mxu0 %v2835_v48 }
  0x57   : > { %655 = vmatpush.bf16.msrb.mxu1 %v2837_v51 }
  0x59   : > { %642 = vmatpush.bf16.msrb.mxu0 %v2843_v63 }
  0x5b   : > { %656 = vmatpush.bf16.msrb.mxu1 %v2845_v2 }
  0x5d   : > { %701 = vmatpush.bf16.msra.mxu0 %v2813_v21 }
  0x5f   : > { %715 = vmatpush.bf16.msra.mxu1 %v2822_v31 }
  0x8b   : > { %v246_v17 = vpop.permute.xlu0 %245 }
  0x8c   : > { %vm250_vm0 = vcmp.eq.s32.totalorder %v2865_v0, %v246_v17 }
  0x8d   : > { %v2040_v25 = vsel %vm250_vm0, 1.0, %v3265_v24 }
  0x93   : > { %v249_v23 = vpop.permute.xlu0 %248 }
  0x94   : > { %vm251_vm1 = vcmp.eq.s32.totalorder %v2865_v0, %v249_v23 }
  0x95   : > { %v2041_v26 = vsel %vm251_vm1, 1.0, %v3265_v24 }
  0x96   : > { %v256_v27 = vpack.c.bf16 %v2041_v26, %v2040_v25 }
  0x98   : > { %2186 = vmatmul.msk.bf16.vlgmr.msrb.gmra.mxu2 %vm525_vm2, %v256_v27  ;;  %2187 = vmatmul.msk.bf16.vlgmr.msrb.gmra.mxu3 %vm525_vm2, %v256_v27 }
  0x99   : > { %663 = vmatpush.bf16.msrb.mxu2 %v2739_v6  ;;  %677 = vmatpush.bf16.msrb.mxu3 %v2741_v9 }
  0x9d   : > { %664 = vmatpush.bf16.msrb.mxu2 %v2744_v12  ;;  %678 = vmatpush.bf16.msrb.mxu3 %v2747_v15 }
  0xa1   : > { %665 = vmatpush.bf16.msrb.mxu2 %v2753_v19  ;;  %679 = vmatpush.bf16.msrb.mxu3 %v2757_v22 }
  0xa5   : > { %666 = vmatpush.bf16.msrb.mxu2 %v2760_v29  ;;  %680 = vmatpush.bf16.msrb.mxu3 %v2767_v35 }
  0xa8   : > { %2188 = vmatmul.msk.bf16.vlgmr.msra.gmra.mxu2 %vm525_vm2, %v256_v27  ;;  %2189 = vmatmul.msk.bf16.vlgmr.msra.gmra.mxu3 %vm525_vm2, %v256_v27 }
  0xa9   : > { %667 = vmatpush.bf16.msrb.mxu2 %v2776_v47  ;;  %681 = vmatpush.bf16.msrb.mxu3 %v2779_v50 }
  0xad   : > { %668 = vmatpush.bf16.msrb.mxu2 %v2788_v59  ;;  %682 = vmatpush.bf16.msrb.mxu3 %v2791_v62 }
  0xb1   : > { %669 = vmatpush.bf16.msrb.mxu2 %v2800_v5  ;;  %683 = vmatpush.bf16.msrb.mxu3 %v2803_v10 }
  0xb5   : > { %670 = vmatpush.bf16.msrb.mxu2 %v2808_v18  ;;  %684 = vmatpush.bf16.msrb.mxu3 %v2811_v20 }
  0xb8   : > { %v486_v30 = vpop.f32.mrf.mxu2 }
  0xb9   : > { %729 = vmatpush.bf16.msra.mxu2 %v2841_v57  ;;  %743 = vmatpush.bf16.msra.mxu3 %v2848_v11  ;;  %v500_v36 = vpop.f32.mrf.mxu3  ;;  %v458_v44 = vpop.f32.mrf.mxu0 }
  0xbb   : > { %v472_v40 = vpop.f32.mrf.mxu1 }
  0xc0   : > { %v488_v37 = vpop.f32.mrf.mxu2 }
  0xc1   : > { %v502_v38 = vpop.f32.mrf.mxu3  ;;  %v460_v56 = vpop.f32.mrf.mxu0 }
  0xc3   : > { %v474_v55 = vpop.f32.mrf.mxu1 }
 0x11b   : > { %v538_v45 = vpop.f32.mrf.mxu2  ;;  %v552_v46 = vpop.f32.mrf.mxu3 }
 0x11c   : > { %v539_v49 = vadd.f32 %v538_v45, %v458_v44  ;;  %v553_v52 = vadd.f32 %v552_v46, %v472_v40 }
 0x11e   : > { %v585_v58 = vmul.f32 0.5, %v539_v49  ;;  %v593_v7 = vmul.f32 0.5, %v553_v52 }
 0x120   : > { %2406 = vtanh.f32 %v585_v58 }
 0x121   : > { %2408 = vtanh.f32 %v593_v7 }
 0x123   : > { %v540_v60 = vpop.f32.mrf.mxu2  ;;  %v554_v61 = vpop.f32.mrf.mxu3 }
 0x124   : > { %v555_v8 = vadd.f32 %v554_v61, %v474_v55  ;;  %v541_v13 = vadd.f32 %v540_v60, %v460_v56 }
 0x126   : > { %v594_v14 = vmul.f32 0.5, %v555_v8  ;;  %v586_v17 = vmul.f32 0.5, %v541_v13  ;;  %v2407_v27 = vpop.eup %2406 }
 0x127   : > { %v2409_v44 = vpop.eup %2408  ;;  %v589_v45 = vadd.f32 1.0, %v2407_v27 }
 0x128   : > { %2410 = vtanh.f32 %v594_v14  ;;  %v597_v46 = vadd.f32 1.0, %v2409_v44 }
 0x129   : > { %2412 = vtanh.f32 %v586_v17  ;;  %v591_v7 = vmul.f32 0.5, %v589_v45 }
 0x12a   : > { %v599_v8 = vmul.f32 0.5, %v597_v46 }
 0x12b   : > { %v566_v23 = vpop.f32.mrf.mxu2  ;;  %v580_v25 = vpop.f32.mrf.mxu3 }
 0x12c   : > { %v567_v26 = vadd.f32 %v566_v23, %v486_v30  ;;  %v581_v40 = vadd.f32 %v580_v25, %v500_v36  ;;  %v611_v23 = vmul.f32 0.0, %v599_v8  ;;  %v3285_v8 = vmov 0.0  }
 0x12e   : > { %2414 = vtanh.f32 %v567_v26  ;;  %v2411_v49 = vpop.eup %2410  ;;  %v603_v58 = vmul.f32 0.5, %v581_v40 }
 0x12f   : > { %v2413_v24 = vpop.eup %2412  ;;  %v598_v13 = vadd.f32 1.0, %v2411_v49 }
 0x130   : > { %v590_v14 = vadd.f32 1.0, %v2413_v24 }
 0x131   : > { %v600_v36 = vmul.f32 0.5, %v598_v13 }
 0x132   : > { %v592_v25 = vmul.f32 0.5, %v590_v14 }
 0x133   : > { %v568_v52 = vpop.f32.mrf.mxu2  ;;  %v582_v55 = vpop.f32.mrf.mxu3  ;;  %v612_v44 = vmul.f32 0.0, %v600_v36 }
 0x134   : > { %v2415_v56 = vpop.eup %2414  ;;  %v569_v60 = vadd.f32 %v568_v52, %v488_v37  ;;  %v583_v61 = vadd.f32 %v582_v55, %v502_v38  ;;  %v2657_v37 = vmov 2  }
 0x135   : > { %v613_v17 = vmul.f32 %v2415_v56, %v591_v7  ;;  %2394 = vset.pattern.permute.xlu2 %v2657_v37 }
 0x136   : > { %2416 = vtanh.f32 %v569_v60  ;;  %v604_v30 = vmul.f32 0.5, %v583_v61  ;;  %788 = vperm.xlu2 %2394, %v2736_v1  }
 0x137   : > { %2418 = vtanh.f32 %v603_v58  ;;  %v2903_v26 = vadd.f32 %v613_v17, %v611_v23  ;;  %v624_v58 = vpop.permute.xlu1 %623  ;;  %v3286_v17 = vld [vmem:[#allocation12_spill] sm:$0xff] }
 0x138   : > { %2420 = vtanh.f32 %v604_v30  ;;  %vm628_vm3 = vcmp.eq.s32.totalorder %v2865_v0, %v624_v58 }
 0x139   : > { %2422 = vtanh.f32 %v2903_v26  ;;  %v2190_v13 = vsel %vm628_vm3, 1.0, %v3285_v8 }
 0x13c   : > { %v2417_v27 = vpop.eup %2416 }
 0x13d   : > { %v614_v11 = vmul.f32 %v2417_v27, %v592_v25  ;;  %v2419_v40 = vpop.eup %2418 }
 0x13e   : > { %v2421_v38 = vpop.eup %2420  ;;  %v607_v24 = vadd.f32 1.0, %v2419_v40  ;;  %791 = vperm.xlu2 %2394, %v2750_v16  }
 0x13f   : > { %v2906_v45 = vadd.f32 %v614_v11, %v612_v44  ;;  %v608_v46 = vadd.f32 1.0, %v2421_v38  ;;  %v2423_v49 = vpop.eup %2422  ;;  %v627_v11 = vpop.permute.xlu1 %626 }
 0x140   : > { %v609_v52 = vmul.f32 0.5, %v607_v24  ;;  %vm629_vm4 = vcmp.eq.s32.totalorder %v2865_v0, %v627_v11 }
 0x141   : > { %2424 = vtanh.f32 %v2906_v45  ;;  %v610_v55 = vmul.f32 0.5, %v608_v46  ;;  %v2191_v30 = vsel %vm629_vm4, 1.0, %v3285_v8 }
 0x142   : > { %v619_v60 = vmul.f32 %v2423_v49, %v609_v52  ;;  %v634_v14 = vpack.c.bf16 %v2191_v30, %v2190_v13 }
 0x147   : > { %v2425_v56 = vpop.eup %2424 }
 0x148   : > { %v620_v61 = vmul.f32 %v2425_v56, %v610_v55 }
 0x14a   : > { %v621_v7 = vpack.c.bf16 %v620_v61, %v619_v60 }
 0x14c   : > { %643 = vmatmul.bf16.vlgmr.msrb.gmra.mxu0 %v621_v7  ;;  %657 = vmatmul.bf16.vlgmr.msrb.gmra.mxu1 %v621_v7 }
 0x14d   : > { %671 = vmatmul.bf16.vlgmr.msrb.gmra.mxu2 %v621_v7  ;;  %685 = vmatmul.bf16.vlgmr.msrb.gmra.mxu3 %v621_v7 }
 0x14e   : > { %800 = vmatpush.bf16.msrb.mxu0 %v2762_v32  ;;  %814 = vmatpush.bf16.msrb.mxu1 %v2764_v33 }
 0x14f   : > { %828 = vmatpush.bf16.msrb.mxu2 %v2739_v6  ;;  %842 = vmatpush.bf16.msrb.mxu3 %v2741_v9 }
 0x152   : > { %801 = vmatpush.bf16.msrb.mxu0 %v2771_v41  ;;  %815 = vmatpush.bf16.msrb.mxu1 %v2773_v42 }
 0x153   : > { %829 = vmatpush.bf16.msrb.mxu2 %v2744_v12  ;;  %843 = vmatpush.bf16.msrb.mxu3 %v2747_v15 }
 0x156   : > { %802 = vmatpush.bf16.msrb.mxu0 %v2783_v53  ;;  %816 = vmatpush.bf16.msrb.mxu1 %v2785_v54 }
 0x157   : > { %830 = vmatpush.bf16.msrb.mxu2 %v2753_v19  ;;  %844 = vmatpush.bf16.msrb.mxu3 %v2757_v22 }
 0x15a   : > { %803 = vmatpush.bf16.msrb.mxu0 %v2795_v3  ;;  %817 = vmatpush.bf16.msrb.mxu1 %v2797_v4 }
 0x15b   : > { %831 = vmatpush.bf16.msrb.mxu2 %v2760_v29  ;;  %845 = vmatpush.bf16.msrb.mxu3 %v2767_v35 }
 0x15c   : > { %2192 = vmatmul.msk.bf16.vlgmr.msra.gmra.mxu0 %vm525_vm2, %v634_v14  ;;  %2193 = vmatmul.msk.bf16.vlgmr.msra.gmra.mxu1 %vm525_vm2, %v634_v14 }
 0x15d   : > { %2194 = vmatmul.msk.bf16.vlgmr.msra.gmra.mxu2 %vm525_vm2, %v634_v14  ;;  %2195 = vmatmul.msk.bf16.vlgmr.msra.gmra.mxu3 %vm525_vm2, %v634_v14 }
 0x15e   : > { %804 = vmatpush.bf16.msrb.mxu0 %v2820_v28  ;;  %818 = vmatpush.bf16.msrb.mxu1 %v2824_v34 }
 0x15f   : > { %832 = vmatpush.bf16.msrb.mxu2 %v2776_v47  ;;  %846 = vmatpush.bf16.msrb.mxu3 %v2779_v50 }
 0x162   : > { %805 = vmatpush.bf16.msrb.mxu0 %v2827_v39  ;;  %819 = vmatpush.bf16.msrb.mxu1 %v2831_v43 }
 0x163   : > { %833 = vmatpush.bf16.msrb.mxu2 %v2788_v59  ;;  %847 = vmatpush.bf16.msrb.mxu3 %v2791_v62 }
 0x166   : > { %806 = vmatpush.bf16.msrb.mxu0 %v2835_v48  ;;  %820 = vmatpush.bf16.msrb.mxu1 %v2837_v51 }
 0x167   : > { %834 = vmatpush.bf16.msrb.mxu2 %v2800_v5  ;;  %848 = vmatpush.bf16.msrb.mxu3 %v2803_v10 }
 0x16a   : > { %807 = vmatpush.bf16.msrb.mxu0 %v2843_v63  ;;  %821 = vmatpush.bf16.msrb.mxu1 %v2845_v2 }
 0x16b   : > { %835 = vmatpush.bf16.msrb.mxu2 %v2808_v18  ;;  %849 = vmatpush.bf16.msrb.mxu3 %v2811_v20 }
 0x16e   : > { %866 = vmatpush.bf16.msra.mxu0 %v2813_v21  ;;  %880 = vmatpush.bf16.msra.mxu1 %v2822_v31 }
 0x16f   : > { %894 = vmatpush.bf16.msra.mxu2 %v2841_v57  ;;  %908 = vmatpush.bf16.msra.mxu3 %v3286_v17 }
 0x1c9   : > { %v644_v23 = vpop.f32.mrf.mxu0  ;;  %v658_v36 = vpop.f32.mrf.mxu1 }
 0x1d0   : > { %v672_v25 = vpop.f32.mrf.mxu2  ;;  %v686_v27 = vpop.f32.mrf.mxu3 }
 0x1d1   : > { %v646_v44 = vpop.f32.mrf.mxu0  ;;  %v660_v40 = vpop.f32.mrf.mxu1 }
 0x1d8   : > { %v674_v37 = vpop.f32.mrf.mxu2  ;;  %v688_v38 = vpop.f32.mrf.mxu3 }
 0x1d9   : > { %v703_v24 = vpop.f32.mrf.mxu0  ;;  %v717_v46 = vpop.f32.mrf.mxu1 }
 0x1da   : > { %v704_v49 = vadd.f32 %v703_v24, %v644_v23  ;;  %v718_v52 = vadd.f32 %v717_v46, %v658_v36 }
 0x1dc   : > { %v750_v55 = vmul.f32 0.5, %v704_v49  ;;  %v758_v56 = vmul.f32 0.5, %v718_v52 }
 0x1de   : > { %2426 = vtanh.f32 %v750_v55 }
 0x1df   : > { %2428 = vtanh.f32 %v758_v56 }
 0x1e0   : > { %v731_v58 = vpop.f32.mrf.mxu2  ;;  %v745_v60 = vpop.f32.mrf.mxu3 }
 0x1e1   : > { %v732_v61 = vadd.f32 %v731_v58, %v672_v25  ;;  %v705_v7 = vpop.f32.mrf.mxu0  ;;  %v719_v11 = vpop.f32.mrf.mxu1  ;;  %v746_v20 = vadd.f32 %v745_v60, %v686_v27 }
 0x1e2   : > { %v706_v13 = vadd.f32 %v705_v7, %v646_v44  ;;  %v720_v30 = vadd.f32 %v719_v11, %v660_v40  ;;  %v2658_v11 = vmov 3  }
 0x1e3   : > { %2430 = vtanh.f32 %v732_v61  ;;  %v768_v25 = vmul.f32 0.5, %v746_v20  ;;  %2396 = vset.pattern.permute.xlu1 %v2658_v11  ;;  %2395 = vset.pattern.permute.xlu0 %v2658_v11 }
 0x1e4   : > { %v2427_v14 = vpop.eup %2426  ;;  %v751_v17 = vmul.f32 0.5, %v706_v13  ;;  %v759_v57 = vmul.f32 0.5, %v720_v30  ;;  %956 = vperm.xlu1 %2396, %v2750_v16   ;;  %953 = vperm.xlu0 %2395, %v2736_v1  }
 0x1e5   : > { %v2429_v31 = vpop.eup %2428  ;;  %v754_v21 = vadd.f32 1.0, %v2427_v14 }
 0x1e6   : > { %v762_v23 = vadd.f32 1.0, %v2429_v31  ;;  %2432 = vtanh.f32 %v751_v17 }
 0x1e7   : > { %2434 = vtanh.f32 %v759_v57  ;;  %v756_v36 = vmul.f32 0.5, %v754_v21 }
 0x1e8   : > { %v764_v24 = vmul.f32 0.5, %v762_v23  ;;  %v733_v46 = vpop.f32.mrf.mxu2  ;;  %v747_v49 = vpop.f32.mrf.mxu3 }
 0x1e9   : > { %v2431_v52 = vpop.eup %2430  ;;  %v734_v55 = vadd.f32 %v733_v46, %v674_v37  ;;  %v748_v56 = vadd.f32 %v747_v49, %v688_v38  ;;  %v789_v46 = vpop.permute.xlu2 %788 }
 0x1ea   : > { %v776_v58 = vmul.f32 %v764_v24, %v2903_v26  ;;  %v778_v61 = vmul.f32 %v2431_v52, %v756_v36  ;;  %vm793_vm5 = vcmp.eq.s32.totalorder %v2865_v0, %v789_v46 }
 0x1eb   : > { %2436 = vtanh.f32 %v734_v55  ;;  %v769_v44 = vmul.f32 0.5, %v748_v56  ;;  %v2196_v55 = vsel %vm793_vm5, 1.0, %v3285_v8 }
 0x1ec   : > { %v2433_v40 = vpop.eup %2432  ;;  %2438 = vtanh.f32 %v768_v25  ;;  %v2956_v21 = vadd.f32 %v778_v61, %v776_v58  ;;  %v3288_v58 = vld [vmem:[#allocation9_spill] sm:$0xff]  ;;  %v3289_v61 = vld [vmem:[#allocation10_spill] sm:$0xff] }
 0x1ed   : > { %v2435_v7 = vpop.eup %2434  ;;  %v755_v27 = vadd.f32 1.0, %v2433_v40  ;;  %2440 = vtanh.f32 %v769_v44  ;;  %v3287_v40 = vld [vmem:[#allocation8_spill] sm:$0xff] }
 0x1ee   : > { %v763_v31 = vadd.f32 1.0, %v2435_v7  ;;  %2442 = vtanh.f32 %v2956_v21  ;;  %v3290_v7 = vld [vmem:[#allocation11_spill] sm:$0xff] }
 0x1ef   : > { %v757_v57 = vmul.f32 0.5, %v755_v27  ;;  %v3291_v27 = vld [vmem:[#allocation12_spill] sm:$0xff] }
 0x1f0   : > { %v765_v17 = vmul.f32 0.5, %v763_v31 }
 0x1f1   : > { %v2437_v60 = vpop.eup %2436  ;;  %v792_v1 = vpop.permute.xlu2 %791 }
 0x1f2   : > { %v777_v20 = vmul.f32 %v765_v17, %v2906_v45  ;;  %v779_v37 = vmul.f32 %v2437_v60, %v757_v57  ;;  %v2439_v38 = vpop.eup %2438  ;;  %vm794_vm6 = vcmp.eq.s32.totalorder %v2865_v0, %v792_v1 }
 0x1f3   : > { %v2441_v13 = vpop.eup %2440  ;;  %v772_v30 = vadd.f32 1.0, %v2439_v38  ;;  %v2197_v56 = vsel %vm794_vm6, 1.0, %v3285_v8 }
 0x1f4   : > { %v2960_v26 = vadd.f32 %v779_v37, %v777_v20  ;;  %v773_v14 = vadd.f32 1.0, %v2441_v13  ;;  %v2443_v23 = vpop.eup %2442  ;;  %v799_v44 = vpack.c.bf16 %v2197_v56, %v2196_v55 }
 0x1f5   : > { %v774_v45 = vmul.f32 0.5, %v772_v30 }
 0x1f6   : > { %2444 = vtanh.f32 %v2960_v26  ;;  %v775_v36 = vmul.f32 0.5, %v773_v14 }
 0x1f7   : > { %v784_v49 = vmul.f32 %v2443_v23, %v774_v45 }
 0x1fc   : > { %v2445_v24 = vpop.eup %2444 }
 0x1fd   : > { %v785_v52 = vmul.f32 %v2445_v24, %v775_v36 }
 0x1ff   : > { %v786_v25 = vpack.c.bf16 %v785_v52, %v784_v49 }
 0x201   : > { %808 = vmatmul.bf16.vlgmr.msrb.gmra.mxu0 %v786_v25  ;;  %822 = vmatmul.bf16.vlgmr.msrb.gmra.mxu1 %v786_v25 }
 0x202   : > { %836 = vmatmul.bf16.vlgmr.msrb.gmra.mxu2 %v786_v25  ;;  %850 = vmatmul.bf16.vlgmr.msrb.gmra.mxu3 %v786_v25 }
 0x203   : > { %965 = vmatpush.bf16.msrb.mxu0 %v2762_v32  ;;  %979 = vmatpush.bf16.msrb.mxu1 %v2764_v33 }
 0x204   : > { %993 = vmatpush.bf16.msrb.mxu2 %v2739_v6  ;;  %1007 = vmatpush.bf16.msrb.mxu3 %v2741_v9 }
 0x207   : > { %966 = vmatpush.bf16.msrb.mxu0 %v2771_v41  ;;  %980 = vmatpush.bf16.msrb.mxu1 %v2773_v42 }
 0x208   : > { %994 = vmatpush.bf16.msrb.mxu2 %v2744_v12  ;;  %1008 = vmatpush.bf16.msrb.mxu3 %v2747_v15 }
 0x20b   : > { %967 = vmatpush.bf16.msrb.mxu0 %v2783_v53  ;;  %981 = vmatpush.bf16.msrb.mxu1 %v2785_v54 }
 0x20c   : > { %995 = vmatpush.bf16.msrb.mxu2 %v2753_v19  ;;  %1009 = vmatpush.bf16.msrb.mxu3 %v2757_v22 }
 0x20f   : > { %968 = vmatpush.bf16.msrb.mxu0 %v2795_v3  ;;  %982 = vmatpush.bf16.msrb.mxu1 %v2797_v4 }
 0x210   : > { %996 = vmatpush.bf16.msrb.mxu2 %v2760_v29  ;;  %1010 = vmatpush.bf16.msrb.mxu3 %v2767_v35 }
 0x211   : > { %2198 = vmatmul.msk.bf16.vlgmr.msra.gmra.mxu0 %vm525_vm2, %v799_v44  ;;  %2199 = vmatmul.msk.bf16.vlgmr.msra.gmra.mxu1 %vm525_vm2, %v799_v44 }
 0x212   : > { %2200 = vmatmul.msk.bf16.vlgmr.msra.gmra.mxu2 %vm525_vm2, %v799_v44  ;;  %2201 = vmatmul.msk.bf16.vlgmr.msra.gmra.mxu3 %vm525_vm2, %v799_v44 }
 0x213   : > { %969 = vmatpush.bf16.msrb.mxu0 %v2820_v28  ;;  %983 = vmatpush.bf16.msrb.mxu1 %v2824_v34 }
 0x214   : > { %997 = vmatpush.bf16.msrb.mxu2 %v2776_v47  ;;  %1011 = vmatpush.bf16.msrb.mxu3 %v2779_v50 }
 0x217   : > { %970 = vmatpush.bf16.msrb.mxu0 %v2827_v39  ;;  %984 = vmatpush.bf16.msrb.mxu1 %v2831_v43 }
 0x218   : > { %998 = vmatpush.bf16.msrb.mxu2 %v2788_v59  ;;  %1012 = vmatpush.bf16.msrb.mxu3 %v2791_v62 }
 0x21b   : > { %971 = vmatpush.bf16.msrb.mxu0 %v2835_v48  ;;  %985 = vmatpush.bf16.msrb.mxu1 %v2837_v51 }
 0x21c   : > { %999 = vmatpush.bf16.msrb.mxu2 %v2800_v5  ;;  %1013 = vmatpush.bf16.msrb.mxu3 %v2803_v10 }
 0x21f   : > { %972 = vmatpush.bf16.msrb.mxu0 %v2843_v63  ;;  %986 = vmatpush.bf16.msrb.mxu1 %v2845_v2 }
 0x220   : > { %1000 = vmatpush.bf16.msrb.mxu2 %v2808_v18  ;;  %1014 = vmatpush.bf16.msrb.mxu3 %v3287_v40 }
 0x223   : > { %1031 = vmatpush.bf16.msra.mxu0 %v3288_v58  ;;  %1045 = vmatpush.bf16.msra.mxu1 %v3289_v61 }
 0x224   : > { %1059 = vmatpush.bf16.msra.mxu2 %v3290_v7  ;;  %1073 = vmatpush.bf16.msra.mxu3 %v3291_v27 }
 0x27e   : > { %v809_v31 = vpop.f32.mrf.mxu0  ;;  %v823_v57 = vpop.f32.mrf.mxu1 }
 0x285   : > { %v837_v17 = vpop.f32.mrf.mxu2  ;;  %v851_v60 = vpop.f32.mrf.mxu3 }
 0x286   : > { %v811_v20 = vpop.f32.mrf.mxu0  ;;  %v825_v37 = vpop.f32.mrf.mxu1 }
 0x28d   : > { %v839_v38 = vpop.f32.mrf.mxu2  ;;  %v853_v11 = vpop.f32.mrf.mxu3 }
 0x28e   : > { %v868_v13 = vpop.f32.mrf.mxu0  ;;  %v882_v30 = vpop.f32.mrf.mxu1 }
 0x28f   : > { %v869_v14 = vadd.f32 %v868_v13, %v809_v31  ;;  %v883_v23 = vadd.f32 %v882_v30, %v823_v57 }
 0x291   : > { %v915_v45 = vmul.f32 0.5, %v869_v14  ;;  %v923_v36 = vmul.f32 0.5, %v883_v23 }
 0x293   : > { %2446 = vtanh.f32 %v915_v45 }
 0x294   : > { %2448 = vtanh.f32 %v923_v36 }
 0x295   : > { %v896_v24 = vpop.f32.mrf.mxu2  ;;  %v910_v46 = vpop.f32.mrf.mxu3 }
 0x296   : > { %v897_v49 = vadd.f32 %v896_v24, %v837_v17  ;;  %v870_v52 = vpop.f32.mrf.mxu0  ;;  %v884_v25 = vpop.f32.mrf.mxu1  ;;  %v911_v58 = vadd.f32 %v910_v46, %v851_v60 }
 0x297   : > { %v871_v1 = vadd.f32 %v870_v52, %v811_v20  ;;  %v885_v55 = vadd.f32 %v884_v25, %v825_v37 }
 0x298   : > { %2450 = vtanh.f32 %v897_v49  ;;  %v933_v17 = vmul.f32 0.5, %v911_v58 }
 0x299   : > { %v2447_v56 = vpop.eup %2446  ;;  %v916_v44 = vmul.f32 0.5, %v871_v1  ;;  %v924_v27 = vmul.f32 0.5, %v885_v55  ;;  %v2659_v1 = vmov 4  }
 0x29a   : > { %v2449_v7 = vpop.eup %2448  ;;  %v919_v61 = vadd.f32 1.0, %v2447_v56  ;;  %2398 = vset.pattern.permute.xlu1 %v2659_v1  ;;  %2397 = vset.pattern.permute.xlu2 %v2659_v1  ;;  %v3018_v56 = vld [vmem:[%s2733_s11] sm:$0xff] }
 0x29b   : > { %v927_v31 = vadd.f32 1.0, %v2449_v7  ;;  %2452 = vtanh.f32 %v916_v44  ;;  %1121 = vperm.xlu1 %2398, %v2750_v16   ;;  %1118 = vperm.xlu2 %2397, %v3018_v56   ;;  %v957_v16 = vpop.permute.xlu1 %956 }
 0x29c   : > { %2454 = vtanh.f32 %v924_v27  ;;  %v921_v57 = vmul.f32 0.5, %v919_v61  ;;  %vm959_vm7 = vcmp.eq.s32.totalorder %v2865_v0, %v957_v16 }
 0x29d   : > { %v929_v13 = vmul.f32 0.5, %v927_v31  ;;  %v898_v30 = vpop.f32.mrf.mxu2  ;;  %v912_v14 = vpop.f32.mrf.mxu3 }
 0x29e   : > { %v2451_v23 = vpop.eup %2450  ;;  %v899_v45 = vadd.f32 %v898_v30, %v839_v38  ;;  %v913_v36 = vadd.f32 %v912_v14, %v853_v11 }
 0x29f   : > { %v941_v24 = vmul.f32 %v929_v13, %v2956_v21  ;;  %v943_v49 = vmul.f32 %v2451_v23, %v921_v57 }
 0x2a0   : > { %2456 = vtanh.f32 %v899_v45  ;;  %v934_v20 = vmul.f32 0.5, %v913_v36  ;;  %v954_v45 = vpop.permute.xlu0 %953  ;;  %v2203_v36 = vsel %vm959_vm7, 1.0, %v3285_v8 }
 0x2a1   : > { %v2453_v37 = vpop.eup %2452  ;;  %2458 = vtanh.f32 %v933_v17  ;;  %v3010_v27 = vadd.f32 %v943_v49, %v941_v24  ;;  %vm958_vm8 = vcmp.eq.s32.totalorder %v2865_v0, %v954_v45  ;;  %v3292_v24 = vld [vmem:[#allocation9_spill] sm:$0xff]  ;;  %v3293_v49 = vld [vmem:[#allocation10_spill] sm:$0xff] }
 0x2a2   : > { %v2455_v52 = vpop.eup %2454  ;;  %v920_v60 = vadd.f32 1.0, %v2453_v37  ;;  %2460 = vtanh.f32 %v934_v20  ;;  %v2202_v20 = vsel %vm958_vm8, 1.0, %v3285_v8 }
 0x2a3   : > { %v928_v7 = vadd.f32 1.0, %v2455_v52  ;;  %2462 = vtanh.f32 %v3010_v27  ;;  %v964_v37 = vpack.c.bf16 %v2203_v36, %v2202_v20  ;;  %v3294_v52 = vld [vmem:[#allocation11_spill] sm:$0xff] }
 0x2a4   : > { %v922_v61 = vmul.f32 0.5, %v920_v60  ;;  %v3295_v60 = vld [vmem:[#allocation12_spill] sm:$0xff] }
 0x2a5   : > { %v930_v46 = vmul.f32 0.5, %v928_v7 }
 0x2a6   : > { %v2457_v25 = vpop.eup %2456 }
 0x2a7   : > { %v942_v58 = vmul.f32 %v930_v46, %v2960_v26  ;;  %v944_v38 = vmul.f32 %v2457_v25, %v922_v61  ;;  %v2459_v11 = vpop.eup %2458 }
 0x2a8   : > { %v2461_v21 = vpop.eup %2460  ;;  %v937_v44 = vadd.f32 1.0, %v2459_v11 }
 0x2a9   : > { %v3014_v55 = vadd.f32 %v944_v38, %v942_v58  ;;  %v938_v26 = vadd.f32 1.0, %v2461_v21  ;;  %v2463_v31 = vpop.eup %2462 }
 0x2aa   : > { %v939_v57 = vmul.f32 0.5, %v937_v44 }
 0x2ab   : > { %2464 = vtanh.f32 %v3014_v55  ;;  %v940_v13 = vmul.f32 0.5, %v938_v26 }
 0x2ac   : > { %v949_v14 = vmul.f32 %v2463_v31, %v939_v57 }
 0x2b1   : > { %v2465_v30 = vpop.eup %2464 }
 0x2b2   : > { %v950_v23 = vmul.f32 %v2465_v30, %v940_v13 }
 0x2b4   : > { %v951_v17 = vpack.c.bf16 %v950_v23, %v949_v14 }
 0x2b6   : > { %973 = vmatmul.bf16.vlgmr.msrb.gmra.mxu0 %v951_v17  ;;  %987 = vmatmul.bf16.vlgmr.msrb.gmra.mxu1 %v951_v17 }
 0x2b7   : > { %1001 = vmatmul.bf16.vlgmr.msrb.gmra.mxu2 %v951_v17  ;;  %1015 = vmatmul.bf16.vlgmr.msrb.gmra.mxu3 %v951_v17 }
 0x2b8   : > { %1130 = vmatpush.bf16.msrb.mxu0 %v2762_v32  ;;  %1144 = vmatpush.bf16.msrb.mxu1 %v2764_v33 }
 0x2b9   : > { %1158 = vmatpush.bf16.msrb.mxu2 %v2739_v6  ;;  %1172 = vmatpush.bf16.msrb.mxu3 %v2741_v9 }
 0x2bc   : > { %1131 = vmatpush.bf16.msrb.mxu0 %v2771_v41  ;;  %1145 = vmatpush.bf16.msrb.mxu1 %v2773_v42 }
 0x2bd   : > { %1159 = vmatpush.bf16.msrb.mxu2 %v2744_v12  ;;  %1173 = vmatpush.bf16.msrb.mxu3 %v2747_v15 }
 0x2c0   : > { %1132 = vmatpush.bf16.msrb.mxu0 %v2783_v53  ;;  %1146 = vmatpush.bf16.msrb.mxu1 %v2785_v54 }
 0x2c1   : > { %1160 = vmatpush.bf16.msrb.mxu2 %v2753_v19  ;;  %1174 = vmatpush.bf16.msrb.mxu3 %v2757_v22 }
 0x2c4   : > { %1133 = vmatpush.bf16.msrb.mxu0 %v2795_v3  ;;  %1147 = vmatpush.bf16.msrb.mxu1 %v2797_v4 }
 0x2c5   : > { %1161 = vmatpush.bf16.msrb.mxu2 %v2760_v29  ;;  %1175 = vmatpush.bf16.msrb.mxu3 %v2767_v35 }
 0x2c6   : > { %2204 = vmatmul.msk.bf16.vlgmr.msra.gmra.mxu0 %vm525_vm2, %v964_v37  ;;  %2205 = vmatmul.msk.bf16.vlgmr.msra.gmra.mxu1 %vm525_vm2, %v964_v37 }
 0x2c7   : > { %2206 = vmatmul.msk.bf16.vlgmr.msra.gmra.mxu2 %vm525_vm2, %v964_v37  ;;  %2207 = vmatmul.msk.bf16.vlgmr.msra.gmra.mxu3 %vm525_vm2, %v964_v37 }
 0x2c8   : > { %1134 = vmatpush.bf16.msrb.mxu0 %v2820_v28  ;;  %1148 = vmatpush.bf16.msrb.mxu1 %v2824_v34 }
 0x2c9   : > { %1162 = vmatpush.bf16.msrb.mxu2 %v2776_v47  ;;  %1176 = vmatpush.bf16.msrb.mxu3 %v2779_v50 }
 0x2cc   : > { %1135 = vmatpush.bf16.msrb.mxu0 %v2827_v39  ;;  %1149 = vmatpush.bf16.msrb.mxu1 %v2831_v43 }
 0x2cd   : > { %1163 = vmatpush.bf16.msrb.mxu2 %v2788_v59  ;;  %1177 = vmatpush.bf16.msrb.mxu3 %v2791_v62 }
 0x2d0   : > { %1136 = vmatpush.bf16.msrb.mxu0 %v2835_v48  ;;  %1150 = vmatpush.bf16.msrb.mxu1 %v2837_v51 }
 0x2d1   : > { %1164 = vmatpush.bf16.msrb.mxu2 %v2800_v5  ;;  %1178 = vmatpush.bf16.msrb.mxu3 %v2803_v10 }
 0x2d4   : > { %1137 = vmatpush.bf16.msrb.mxu0 %v2843_v63  ;;  %1151 = vmatpush.bf16.msrb.mxu1 %v2845_v2 }
 0x2d5   : > { %1165 = vmatpush.bf16.msrb.mxu2 %v2808_v18  ;;  %1179 = vmatpush.bf16.msrb.mxu3 %v3287_v40 }
 0x2d8   : > { %1196 = vmatpush.bf16.msra.mxu0 %v3292_v24  ;;  %1210 = vmatpush.bf16.msra.mxu1 %v3293_v49 }
 0x2d9   : > { %1224 = vmatpush.bf16.msra.mxu2 %v3294_v52  ;;  %1238 = vmatpush.bf16.msra.mxu3 %v3295_v60 }
 0x333   : > { %v974_v7 = vpop.f32.mrf.mxu0  ;;  %v988_v61 = vpop.f32.mrf.mxu1 }
 0x33a   : > { %v1002_v46 = vpop.f32.mrf.mxu2  ;;  %v1016_v25 = vpop.f32.mrf.mxu3 }
 0x33b   : > { %v976_v58 = vpop.f32.mrf.mxu0  ;;  %v990_v38 = vpop.f32.mrf.mxu1 }
 0x342   : > { %v1004_v11 = vpop.f32.mrf.mxu2  ;;  %v1018_v1 = vpop.f32.mrf.mxu3 }
 0x343   : > { %v1033_v21 = vpop.f32.mrf.mxu0  ;;  %v1047_v44 = vpop.f32.mrf.mxu1 }
 0x344   : > { %v1034_v26 = vadd.f32 %v1033_v21, %v974_v7  ;;  %v1048_v31 = vadd.f32 %v1047_v44, %v988_v61 }
 0x346   : > { %v1080_v57 = vmul.f32 0.5, %v1034_v26  ;;  %v1088_v13 = vmul.f32 0.5, %v1048_v31 }
 0x348   : > { %2466 = vtanh.f32 %v1080_v57 }
 0x349   : > { %2468 = vtanh.f32 %v1088_v13 }
 0x34a   : > { %v1061_v30 = vpop.f32.mrf.mxu2  ;;  %v1075_v14 = vpop.f32.mrf.mxu3 }
 0x34b   : > { %v1062_v23 = vadd.f32 %v1061_v30, %v1002_v46  ;;  %v1035_v17 = vpop.f32.mrf.mxu0  ;;  %v1049_v16 = vpop.f32.mrf.mxu1  ;;  %v1076_v24 = vadd.f32 %v1075_v14, %v1016_v25 }
 0x34c   : > { %v1036_v45 = vadd.f32 %v1035_v17, %v976_v58  ;;  %v1050_v36 = vadd.f32 %v1049_v16, %v990_v38 }
 0x34d   : > { %2470 = vtanh.f32 %v1062_v23  ;;  %v1098_v46 = vmul.f32 0.5, %v1076_v24 }
 0x34e   : > { %v2467_v20 = vpop.eup %2466  ;;  %v1081_v37 = vmul.f32 0.5, %v1036_v45  ;;  %v1089_v60 = vmul.f32 0.5, %v1050_v36  ;;  %v2660_v45 = vmov 5  }
 0x34f   : > { %v2469_v52 = vpop.eup %2468  ;;  %v1084_v49 = vadd.f32 1.0, %v2467_v20  ;;  %2400 = vset.pattern.permute.xlu0 %v2660_v45  ;;  %2399 = vset.pattern.permute.xlu2 %v2660_v45  ;;  %v3074_v20 = vld [vmem:[%s2733_s11 + $0x8] sm:$0xff] }
 0x350   : > { %v1092_v7 = vadd.f32 1.0, %v2469_v52  ;;  %2472 = vtanh.f32 %v1081_v37  ;;  %1286 = vperm.xlu0 %2400, %v3074_v20   ;;  %1283 = vperm.xlu2 %2399, %v3018_v56  }
 0x351   : > { %2474 = vtanh.f32 %v1089_v60  ;;  %v1086_v61 = vmul.f32 0.5, %v1084_v49 }
 0x352   : > { %v1094_v21 = vmul.f32 0.5, %v1092_v7  ;;  %v1063_v44 = vpop.f32.mrf.mxu2  ;;  %v1077_v26 = vpop.f32.mrf.mxu3 }
 0x353   : > { %v2471_v31 = vpop.eup %2470  ;;  %v1064_v57 = vadd.f32 %v1063_v44, %v1004_v11  ;;  %v1078_v13 = vadd.f32 %v1077_v26, %v1018_v1 }
 0x354   : > { %v1106_v30 = vmul.f32 %v1094_v21, %v3010_v27  ;;  %v1108_v23 = vmul.f32 %v2471_v31, %v1086_v61 }
 0x355   : > { %2476 = vtanh.f32 %v1064_v57  ;;  %v1099_v58 = vmul.f32 0.5, %v1078_v13  ;;  %v1119_v57 = vpop.permute.xlu2 %1118  ;;  %v1122_v13 = vpop.permute.xlu1 %1121 }
 0x356   : > { %v2473_v38 = vpop.eup %2472  ;;  %2478 = vtanh.f32 %v1098_v46  ;;  %v3067_v60 = vadd.f32 %v1108_v23, %v1106_v30  ;;  %vm1123_vm9 = vcmp.eq.s32.totalorder %v2865_v0, %v1119_v57  ;;  %vm1124_vm10 = vcmp.eq.s32.totalorder %v2865_v0, %v1122_v13  ;;  %v3296_v23 = vld [vmem:[#allocation9_spill] sm:$0xff] }
 0x357   : > { %v2475_v17 = vpop.eup %2474  ;;  %v1085_v25 = vadd.f32 1.0, %v2473_v38  ;;  %2480 = vtanh.f32 %v1099_v58  ;;  %v2208_v58 = vsel %vm1123_vm9, 1.0, %v3285_v8  ;;  %v2209_v38 = vsel %vm1124_vm10, 1.0, %v3285_v8 }
 0x358   : > { %v1093_v52 = vadd.f32 1.0, %v2475_v17  ;;  %2482 = vtanh.f32 %v3067_v60  ;;  %v1129_v30 = vpack.c.bf16 %v2209_v38, %v2208_v58  ;;  %v3297_v17 = vld [vmem:[#allocation10_spill] sm:$0xff] }
 0x359   : > { %v1087_v49 = vmul.f32 0.5, %v1085_v25  ;;  %v3298_v25 = vld [vmem:[#allocation11_spill] sm:$0xff] }
 0x35a   : > { %v1095_v14 = vmul.f32 0.5, %v1093_v52  ;;  %v3299_v52 = vld [vmem:[#allocation12_spill] sm:$0xff] }
 0x35b   : > { %v2477_v16 = vpop.eup %2476 }
 0x35c   : > { %v1107_v24 = vmul.f32 %v1095_v14, %v3014_v55  ;;  %v1109_v11 = vmul.f32 %v2477_v16, %v1087_v49  ;;  %v2479_v1 = vpop.eup %2478 }
 0x35d   : > { %v2481_v27 = vpop.eup %2480  ;;  %v1102_v37 = vadd.f32 1.0, %v2479_v1 }
 0x35e   : > { %v3071_v36 = vadd.f32 %v1109_v11, %v1107_v24  ;;  %v1103_v55 = vadd.f32 1.0, %v2481_v27  ;;  %v2483_v7 = vpop.eup %2482 }
 0x35f   : > { %v1104_v61 = vmul.f32 0.5, %v1102_v37 }
 0x360   : > { %2484 = vtanh.f32 %v3071_v36  ;;  %v1105_v21 = vmul.f32 0.5, %v1103_v55 }
 0x361   : > { %v1114_v26 = vmul.f32 %v2483_v7, %v1104_v61 }
 0x366   : > { %v2485_v44 = vpop.eup %2484 }
 0x367   : > { %v1115_v31 = vmul.f32 %v2485_v44, %v1105_v21 }
 0x369   : > { %v1116_v46 = vpack.c.bf16 %v1115_v31, %v1114_v26 }
 0x36b   : > { %1138 = vmatmul.bf16.vlgmr.msrb.gmra.mxu0 %v1116_v46  ;;  %1152 = vmatmul.bf16.vlgmr.msrb.gmra.mxu1 %v1116_v46 }
 0x36c   : > { %1166 = vmatmul.bf16.vlgmr.msrb.gmra.mxu2 %v1116_v46  ;;  %1180 = vmatmul.bf16.vlgmr.msrb.gmra.mxu3 %v1116_v46 }
 0x36d   : > { %1295 = vmatpush.bf16.msrb.mxu0 %v2762_v32  ;;  %1309 = vmatpush.bf16.msrb.mxu1 %v2764_v33 }
 0x36e   : > { %1323 = vmatpush.bf16.msrb.mxu2 %v2739_v6  ;;  %1337 = vmatpush.bf16.msrb.mxu3 %v2741_v9 }
 0x371   : > { %1296 = vmatpush.bf16.msrb.mxu0 %v2771_v41  ;;  %1310 = vmatpush.bf16.msrb.mxu1 %v2773_v42 }
 0x372   : > { %1324 = vmatpush.bf16.msrb.mxu2 %v2744_v12  ;;  %1338 = vmatpush.bf16.msrb.mxu3 %v2747_v15 }
 0x375   : > { %1297 = vmatpush.bf16.msrb.mxu0 %v2783_v53  ;;  %1311 = vmatpush.bf16.msrb.mxu1 %v2785_v54 }
 0x376   : > { %1325 = vmatpush.bf16.msrb.mxu2 %v2753_v19  ;;  %1339 = vmatpush.bf16.msrb.mxu3 %v2757_v22 }
 0x379   : > { %1298 = vmatpush.bf16.msrb.mxu0 %v2795_v3  ;;  %1312 = vmatpush.bf16.msrb.mxu1 %v2797_v4 }
 0x37a   : > { %1326 = vmatpush.bf16.msrb.mxu2 %v2760_v29  ;;  %1340 = vmatpush.bf16.msrb.mxu3 %v2767_v35 }
 0x37b   : > { %2210 = vmatmul.msk.bf16.vlgmr.msra.gmra.mxu0 %vm525_vm2, %v1129_v30  ;;  %2211 = vmatmul.msk.bf16.vlgmr.msra.gmra.mxu1 %vm525_vm2, %v1129_v30 }
 0x37c   : > { %2212 = vmatmul.msk.bf16.vlgmr.msra.gmra.mxu2 %vm525_vm2, %v1129_v30  ;;  %2213 = vmatmul.msk.bf16.vlgmr.msra.gmra.mxu3 %vm525_vm2, %v1129_v30 }
 0x37d   : > { %1299 = vmatpush.bf16.msrb.mxu0 %v2820_v28  ;;  %1313 = vmatpush.bf16.msrb.mxu1 %v2824_v34 }
 0x37e   : > { %1327 = vmatpush.bf16.msrb.mxu2 %v2776_v47  ;;  %1341 = vmatpush.bf16.msrb.mxu3 %v2779_v50 }
 0x381   : > { %1300 = vmatpush.bf16.msrb.mxu0 %v2827_v39  ;;  %1314 = vmatpush.bf16.msrb.mxu1 %v2831_v43 }
 0x382   : > { %1328 = vmatpush.bf16.msrb.mxu2 %v2788_v59  ;;  %1342 = vmatpush.bf16.msrb.mxu3 %v2791_v62 }
 0x385   : > { %1301 = vmatpush.bf16.msrb.mxu0 %v2835_v48  ;;  %1315 = vmatpush.bf16.msrb.mxu1 %v2837_v51 }
 0x386   : > { %1329 = vmatpush.bf16.msrb.mxu2 %v2800_v5  ;;  %1343 = vmatpush.bf16.msrb.mxu3 %v2803_v10 }
 0x389   : > { %1302 = vmatpush.bf16.msrb.mxu0 %v2843_v63  ;;  %1316 = vmatpush.bf16.msrb.mxu1 %v2845_v2 }
 0x38a   : > { %1330 = vmatpush.bf16.msrb.mxu2 %v2808_v18  ;;  %1344 = vmatpush.bf16.msrb.mxu3 %v3287_v40 }
 0x38d   : > { %1361 = vmatpush.bf16.msra.mxu0 %v3296_v23  ;;  %1375 = vmatpush.bf16.msra.mxu1 %v3297_v17 }
 0x38e   : > { %1389 = vmatpush.bf16.msra.mxu2 %v3298_v25  ;;  %1403 = vmatpush.bf16.msra.mxu3 %v3299_v52 }
 0x3e8   : > { %v1139_v49 = vpop.f32.mrf.mxu0  ;;  %v1153_v14 = vpop.f32.mrf.mxu1 }
 0x3ef   : > { %v1167_v16 = vpop.f32.mrf.mxu2  ;;  %v1181_v24 = vpop.f32.mrf.mxu3 }
 0x3f0   : > { %v1141_v11 = vpop.f32.mrf.mxu0  ;;  %v1155_v1 = vpop.f32.mrf.mxu1 }
 0x3f7   : > { %v1169_v45 = vpop.f32.mrf.mxu2  ;;  %v1183_v27 = vpop.f32.mrf.mxu3 }
 0x3f8   : > { %v1198_v37 = vpop.f32.mrf.mxu0  ;;  %v1212_v55 = vpop.f32.mrf.mxu1 }
 0x3f9   : > { %v1199_v7 = vadd.f32 %v1198_v37, %v1139_v49  ;;  %v1213_v61 = vadd.f32 %v1212_v55, %v1153_v14 }
 0x3fb   : > { %v1245_v21 = vmul.f32 0.5, %v1199_v7  ;;  %v1253_v44 = vmul.f32 0.5, %v1213_v61 }
 0x3fd   : > { %2486 = vtanh.f32 %v1245_v21 }
 0x3fe   : > { %2488 = vtanh.f32 %v1253_v44 }
 0x3ff   : > { %v1226_v26 = vpop.f32.mrf.mxu2  ;;  %v1240_v31 = vpop.f32.mrf.mxu3 }
 0x400   : > { %v1227_v46 = vadd.f32 %v1226_v26, %v1167_v16  ;;  %v1200_v57 = vpop.f32.mrf.mxu0  ;;  %v1214_v13 = vpop.f32.mrf.mxu1  ;;  %v1241_v40 = vadd.f32 %v1240_v31, %v1181_v24 }
 0x401   : > { %v1201_v58 = vadd.f32 %v1200_v57, %v1141_v11  ;;  %v1215_v38 = vadd.f32 %v1214_v13, %v1155_v1  ;;  %v2661_v13 = vmov 6  }
 0x402   : > { %2490 = vtanh.f32 %v1227_v46  ;;  %v1263_v16 = vmul.f32 0.5, %v1241_v40  ;;  %2401 = vset.pattern.permute.xlu1 %v2661_v13  ;;  %2402 = vset.pattern.permute.xlu2 %v2661_v13 }
 0x403   : > { %v2487_v30 = vpop.eup %2486  ;;  %v1246_v52 = vmul.f32 0.5, %v1201_v58  ;;  %v1254_v25 = vmul.f32 0.5, %v1215_v38  ;;  %1448 = vperm.xlu1 %2401, %v3018_v56   ;;  %1451 = vperm.xlu2 %2402, %v3074_v20  }
 0x404   : > { %v2489_v17 = vpop.eup %2488  ;;  %v1249_v23 = vadd.f32 1.0, %v2487_v30 }
 0x405   : > { %v1257_v49 = vadd.f32 1.0, %v2489_v17  ;;  %2492 = vtanh.f32 %v1246_v52 }
 0x406   : > { %2494 = vtanh.f32 %v1254_v25  ;;  %v1251_v14 = vmul.f32 0.5, %v1249_v23 }
 0x407   : > { %v1259_v37 = vmul.f32 0.5, %v1257_v49  ;;  %v1228_v55 = vpop.f32.mrf.mxu2  ;;  %v1242_v7 = vpop.f32.mrf.mxu3 }
 0x408   : > { %v2491_v61 = vpop.eup %2490  ;;  %v1229_v21 = vadd.f32 %v1228_v55, %v1169_v45  ;;  %v1243_v44 = vadd.f32 %v1242_v7, %v1183_v27 }
 0x409   : > { %v1271_v26 = vmul.f32 %v1259_v37, %v3067_v60  ;;  %v1273_v46 = vmul.f32 %v2491_v61, %v1251_v14 }
 0x40a   : > { %2496 = vtanh.f32 %v1229_v21  ;;  %v1264_v11 = vmul.f32 0.5, %v1243_v44  ;;  %v1287_v21 = vpop.permute.xlu0 %1286 }
 0x40b   : > { %v2493_v1 = vpop.eup %2492  ;;  %2498 = vtanh.f32 %v1263_v16  ;;  %v3124_v23 = vadd.f32 %v1273_v46, %v1271_v26  ;;  %v1284_v16 = vpop.permute.xlu2 %1283  ;;  %vm1289_vm12 = vcmp.eq.s32.totalorder %v2865_v0, %v1287_v21  ;;  %v3300_v26 = vld [vmem:[#allocation8_spill] sm:$0xff]  ;;  %v3301_v46 = vld [vmem:[#allocation9_spill] sm:$0xff] }
 0x40c   : > { %v2495_v57 = vpop.eup %2494  ;;  %v1250_v24 = vadd.f32 1.0, %v2493_v1  ;;  %2500 = vtanh.f32 %v1264_v11  ;;  %vm1288_vm11 = vcmp.eq.s32.totalorder %v2865_v0, %v1284_v16  ;;  %v2215_v11 = vsel %vm1289_vm12, 1.0, %v3285_v8 }
 0x40d   : > { %v1258_v17 = vadd.f32 1.0, %v2495_v57  ;;  %2502 = vtanh.f32 %v3124_v23  ;;  %v2214_v44 = vsel %vm1288_vm11, 1.0, %v3285_v8  ;;  %v3302_v57 = vld [vmem:[#allocation10_spill] sm:$0xff] }
 0x40e   : > { %v1252_v25 = vmul.f32 0.5, %v1250_v24  ;;  %v1294_v1 = vpack.c.bf16 %v2215_v11, %v2214_v44  ;;  %v3303_v24 = vld [vmem:[#allocation11_spill] sm:$0xff] }
 0x40f   : > { %v1260_v52 = vmul.f32 0.5, %v1258_v17  ;;  %v3304_v17 = vld [vmem:[#allocation12_spill] sm:$0xff] }
 0x410   : > { %v2497_v31 = vpop.eup %2496 }
 0x411   : > { %v1272_v40 = vmul.f32 %v1260_v52, %v3071_v36  ;;  %v1274_v45 = vmul.f32 %v2497_v31, %v1252_v25  ;;  %v2499_v27 = vpop.eup %2498 }
 0x412   : > { %v2501_v58 = vpop.eup %2500  ;;  %v1267_v38 = vadd.f32 1.0, %v2499_v27 }
 0x413   : > { %v3128_v60 = vadd.f32 %v1274_v45, %v1272_v40  ;;  %v1268_v30 = vadd.f32 1.0, %v2501_v58  ;;  %v2503_v49 = vpop.eup %2502 }
 0x414   : > { %v1269_v36 = vmul.f32 0.5, %v1267_v38 }
 0x415   : > { %2504 = vtanh.f32 %v3128_v60  ;;  %v1270_v14 = vmul.f32 0.5, %v1268_v30 }
 0x416   : > { %v1279_v55 = vmul.f32 %v2503_v49, %v1269_v36 }
 0x41b   : > { %v2505_v37 = vpop.eup %2504 }
 0x41c   : > { %v1280_v7 = vmul.f32 %v2505_v37, %v1270_v14 }
 0x41e   : > { %v1281_v61 = vpack.c.bf16 %v1280_v7, %v1279_v55 }
 0x420   : > { %1303 = vmatmul.bf16.vlgmr.msrb.gmra.mxu0 %v1281_v61  ;;  %1317 = vmatmul.bf16.vlgmr.msrb.gmra.mxu1 %v1281_v61 }
 0x421   : > { %1331 = vmatmul.bf16.vlgmr.msrb.gmra.mxu2 %v1281_v61  ;;  %1345 = vmatmul.bf16.vlgmr.msrb.gmra.mxu3 %v1281_v61 }
 0x422   : > { %1460 = vmatpush.bf16.msrb.mxu0 %v2762_v32  ;;  %1474 = vmatpush.bf16.msrb.mxu1 %v2764_v33 }
 0x423   : > { %1488 = vmatpush.bf16.msrb.mxu2 %v2739_v6  ;;  %1502 = vmatpush.bf16.msrb.mxu3 %v2741_v9 }
 0x426   : > { %1461 = vmatpush.bf16.msrb.mxu0 %v2771_v41  ;;  %1475 = vmatpush.bf16.msrb.mxu1 %v2773_v42 }
 0x427   : > { %1489 = vmatpush.bf16.msrb.mxu2 %v2744_v12  ;;  %1503 = vmatpush.bf16.msrb.mxu3 %v2747_v15 }
 0x42a   : > { %1462 = vmatpush.bf16.msrb.mxu0 %v2783_v53  ;;  %1476 = vmatpush.bf16.msrb.mxu1 %v2785_v54 }
 0x42b   : > { %1490 = vmatpush.bf16.msrb.mxu2 %v2753_v19  ;;  %1504 = vmatpush.bf16.msrb.mxu3 %v2757_v22 }
 0x42e   : > { %1463 = vmatpush.bf16.msrb.mxu0 %v2795_v3  ;;  %1477 = vmatpush.bf16.msrb.mxu1 %v2797_v4 }
 0x42f   : > { %1491 = vmatpush.bf16.msrb.mxu2 %v2760_v29  ;;  %1505 = vmatpush.bf16.msrb.mxu3 %v2767_v35 }
 0x430   : > { %2216 = vmatmul.msk.bf16.vlgmr.msra.gmra.mxu0 %vm525_vm2, %v1294_v1  ;;  %2217 = vmatmul.msk.bf16.vlgmr.msra.gmra.mxu1 %vm525_vm2, %v1294_v1 }
 0x431   : > { %2218 = vmatmul.msk.bf16.vlgmr.msra.gmra.mxu2 %vm525_vm2, %v1294_v1  ;;  %2219 = vmatmul.msk.bf16.vlgmr.msra.gmra.mxu3 %vm525_vm2, %v1294_v1 }
 0x432   : > { %1464 = vmatpush.bf16.msrb.mxu0 %v2820_v28  ;;  %1478 = vmatpush.bf16.msrb.mxu1 %v2824_v34 }
 0x433   : > { %1492 = vmatpush.bf16.msrb.mxu2 %v2776_v47  ;;  %1506 = vmatpush.bf16.msrb.mxu3 %v2779_v50 }
 0x436   : > { %1465 = vmatpush.bf16.msrb.mxu0 %v2827_v39  ;;  %1479 = vmatpush.bf16.msrb.mxu1 %v2831_v43 }
 0x437   : > { %1493 = vmatpush.bf16.msrb.mxu2 %v2788_v59  ;;  %1507 = vmatpush.bf16.msrb.mxu3 %v2791_v62 }
 0x43a   : > { %1466 = vmatpush.bf16.msrb.mxu0 %v2835_v48  ;;  %1480 = vmatpush.bf16.msrb.mxu1 %v2837_v51 }
 0x43b   : > { %1494 = vmatpush.bf16.msrb.mxu2 %v2800_v5  ;;  %1508 = vmatpush.bf16.msrb.mxu3 %v2803_v10 }
 0x43e   : > { %1467 = vmatpush.bf16.msrb.mxu0 %v2843_v63  ;;  %1481 = vmatpush.bf16.msrb.mxu1 %v2845_v2 }
 0x43f   : > { %1495 = vmatpush.bf16.msrb.mxu2 %v2808_v18  ;;  %1509 = vmatpush.bf16.msrb.mxu3 %v3300_v26 }
 0x442   : > { %1526 = vmatpush.bf16.msra.mxu0 %v3301_v46  ;;  %1540 = vmatpush.bf16.msra.mxu1 %v3302_v57 }
 0x443   : > { %1554 = vmatpush.bf16.msra.mxu2 %v3303_v24  ;;  %1568 = vmatpush.bf16.msra.mxu3 %v3304_v17 }
 0x49d   : > { %v1304_v25 = vpop.f32.mrf.mxu0  ;;  %v1318_v52 = vpop.f32.mrf.mxu1 }
 0x4a4   : > { %v1332_v31 = vpop.f32.mrf.mxu2  ;;  %v1346_v40 = vpop.f32.mrf.mxu3 }
 0x4a5   : > { %v1306_v45 = vpop.f32.mrf.mxu0  ;;  %v1320_v27 = vpop.f32.mrf.mxu1 }
 0x4ac   : > { %v1334_v13 = vpop.f32.mrf.mxu2  ;;  %v1348_v58 = vpop.f32.mrf.mxu3 }
 0x4ad   : > { %v1363_v38 = vpop.f32.mrf.mxu0  ;;  %v1377_v30 = vpop.f32.mrf.mxu1 }
 0x4ae   : > { %v1364_v49 = vadd.f32 %v1363_v38, %v1304_v25  ;;  %v1378_v36 = vadd.f32 %v1377_v30, %v1318_v52 }
 0x4b0   : > { %v1410_v14 = vmul.f32 0.5, %v1364_v49  ;;  %v1418_v37 = vmul.f32 0.5, %v1378_v36 }
 0x4b2   : > { %2506 = vtanh.f32 %v1410_v14 }
 0x4b3   : > { %2508 = vtanh.f32 %v1418_v37 }
 0x4b4   : > { %v1391_v55 = vpop.f32.mrf.mxu2  ;;  %v1405_v7 = vpop.f32.mrf.mxu3 }
 0x4b5   : > { %v1392_v61 = vadd.f32 %v1391_v55, %v1332_v31  ;;  %v1365_v16 = vpop.f32.mrf.mxu0  ;;  %v1379_v21 = vpop.f32.mrf.mxu1  ;;  %v1406_v26 = vadd.f32 %v1405_v7, %v1346_v40 }
 0x4b6   : > { %v1366_v44 = vadd.f32 %v1365_v16, %v1306_v45  ;;  %v1380_v11 = vadd.f32 %v1379_v21, %v1320_v27  ;;  %v2662_v21 = vmov 7  }
 0x4b7   : > { %2510 = vtanh.f32 %v1392_v61  ;;  %v1428_v31 = vmul.f32 0.5, %v1406_v26  ;;  %2403 = vset.pattern.permute.xlu1 %v2662_v21  ;;  %2404 = vset.pattern.permute.xlu2 %v2662_v21 }
 0x4b8   : > { %v2507_v1 = vpop.eup %2506  ;;  %v1411_v17 = vmul.f32 0.5, %v1366_v44  ;;  %v1419_v24 = vmul.f32 0.5, %v1380_v11  ;;  %1613 = vperm.xlu1 %2403, %v3018_v56   ;;  %1616 = vperm.xlu2 %2404, %v3074_v20   ;;  %v1452_v56 = vpop.permute.xlu2 %1451 }
 0x4b9   : > { %v2509_v57 = vpop.eup %2508  ;;  %v1414_v46 = vadd.f32 1.0, %v2507_v1  ;;  %2405 = vset.pattern.permute.xlu0 %v2662_v21  ;;  %v1449_v20 = vpop.permute.xlu1 %1448  ;;  %vm1454_vm13 = vcmp.eq.s32.totalorder %v2865_v0, %v1452_v56 }
 0x4ba   : > { %v1422_v25 = vadd.f32 1.0, %v2509_v57  ;;  %2512 = vtanh.f32 %v1411_v17  ;;  %vm1453_vm14 = vcmp.eq.s32.totalorder %v2865_v0, %v1449_v20 }
 0x4bb   : > { %2514 = vtanh.f32 %v1419_v24  ;;  %v1416_v52 = vmul.f32 0.5, %v1414_v46 }
 0x4bc   : > { %v1424_v38 = vmul.f32 0.5, %v1422_v25  ;;  %v1393_v30 = vpop.f32.mrf.mxu2  ;;  %v1407_v49 = vpop.f32.mrf.mxu3 }
 0x4bd   : > { %v2511_v36 = vpop.eup %2510  ;;  %v1394_v14 = vadd.f32 %v1393_v30, %v1334_v13  ;;  %v1408_v37 = vadd.f32 %v1407_v49, %v1348_v58 }
 0x4be   : > { %v1436_v55 = vmul.f32 %v1424_v38, %v3124_v23  ;;  %v1438_v61 = vmul.f32 %v2511_v36, %v1416_v52 }
 0x4bf   : > { %2516 = vtanh.f32 %v1394_v14  ;;  %v1429_v45 = vmul.f32 0.5, %v1408_v37 }
 0x4c0   : > { %v2513_v27 = vpop.eup %2512  ;;  %2518 = vtanh.f32 %v1428_v31  ;;  %v3178_v46 = vadd.f32 %v1438_v61, %v1436_v55 }
 0x4c1   : > { %v2515_v16 = vpop.eup %2514  ;;  %v1415_v40 = vadd.f32 1.0, %v2513_v27  ;;  %2520 = vtanh.f32 %v1429_v45 }
 0x4c2   : > { %v1423_v57 = vadd.f32 1.0, %v2515_v16  ;;  %2522 = vtanh.f32 %v3178_v46 }
 0x4c3   : > { %v1417_v24 = vmul.f32 0.5, %v1415_v40 }
 0x4c4   : > { %v1425_v17 = vmul.f32 0.5, %v1423_v57 }
 0x4c5   : > { %v2517_v7 = vpop.eup %2516 }
 0x4c6   : > { %v1437_v26 = vmul.f32 %v1425_v17, %v3128_v60  ;;  %v1439_v13 = vmul.f32 %v2517_v7, %v1417_v24  ;;  %v2519_v58 = vpop.eup %2518 }
 0x4c7   : > { %v2521_v44 = vpop.eup %2520  ;;  %v1432_v11 = vadd.f32 1.0, %v2519_v58 }
 0x4c8   : > { %v3182_v23 = vadd.f32 %v1439_v13, %v1437_v26  ;;  %v1433_v1 = vadd.f32 1.0, %v2521_v44  ;;  %v2523_v60 = vpop.eup %2522 }
 0x4c9   : > { %v1434_v25 = vmul.f32 0.5, %v1432_v11 }
 0x4ca   : > { %2524 = vtanh.f32 %v3182_v23  ;;  %v1435_v52 = vmul.f32 0.5, %v1433_v1 }
 0x4cb   : > { %v1444_v30 = vmul.f32 %v2523_v60, %v1434_v25 }
 0x4d0   : > { %v2525_v38 = vpop.eup %2524 }
 0x4d1   : > { %v1445_v49 = vmul.f32 %v2525_v38, %v1435_v52 }
 0x4d3   : > { %v1446_v36 = vpack.c.bf16 %v1445_v49, %v1444_v30 }
 0x4d5   : > { %1468 = vmatmul.bf16.vlgmr.msrb.gmra.mxu0 %v1446_v36  ;;  %1482 = vmatmul.bf16.vlgmr.msrb.gmra.mxu1 %v1446_v36 }
 0x4d6   : > { %1496 = vmatmul.bf16.vlgmr.msrb.gmra.mxu2 %v1446_v36  ;;  %1510 = vmatmul.bf16.vlgmr.msrb.gmra.mxu3 %v1446_v36 }
 0x4d7   : > { %1625 = vmatpush.bf16.msrb.mxu0 %v2762_v32  ;;  %1639 = vmatpush.bf16.msrb.mxu1 %v2764_v33  ;;  %v2221_v32 = vsel %vm1454_vm13, 1.0, %v3285_v8  ;;  %v2220_v33 = vsel %vm1453_vm14, 1.0, %v3285_v8 }
 0x4d8   : > { %1653 = vmatpush.bf16.msrb.mxu2 %v2739_v6  ;;  %1667 = vmatpush.bf16.msrb.mxu3 %v2741_v9  ;;  %v1459_v6 = vpack.c.bf16 %v2221_v32, %v2220_v33  ;;  %v3305_v9 = vld [vmem:[#allocation8_spill] sm:$0xff] }
 0x4db   : > { %1626 = vmatpush.bf16.msrb.mxu0 %v2771_v41  ;;  %1640 = vmatpush.bf16.msrb.mxu1 %v2773_v42 }
 0x4dc   : > { %1654 = vmatpush.bf16.msrb.mxu2 %v2744_v12  ;;  %1668 = vmatpush.bf16.msrb.mxu3 %v2747_v15  ;;  %v3306_v12 = vld [vmem:[#allocation9_spill] sm:$0xff]  ;;  %v3307_v15 = vld [vmem:[#allocation10_spill] sm:$0xff] }
 0x4df   : > { %1627 = vmatpush.bf16.msrb.mxu0 %v2783_v53  ;;  %1641 = vmatpush.bf16.msrb.mxu1 %v2785_v54 }
 0x4e0   : > { %1655 = vmatpush.bf16.msrb.mxu2 %v2753_v19  ;;  %1669 = vmatpush.bf16.msrb.mxu3 %v2757_v22  ;;  %v3308_v19 = vld [vmem:[#allocation11_spill] sm:$0xff]  ;;  %v3309_v22 = vld [vmem:[#allocation12_spill] sm:$0xff] }
 0x4e3   : > { %1628 = vmatpush.bf16.msrb.mxu0 %v2795_v3  ;;  %1642 = vmatpush.bf16.msrb.mxu1 %v2797_v4 }
 0x4e4   : > { %1656 = vmatpush.bf16.msrb.mxu2 %v2760_v29  ;;  %1670 = vmatpush.bf16.msrb.mxu3 %v2767_v35 }
 0x4e5   : > { %2222 = vmatmul.msk.bf16.vlgmr.msra.gmra.mxu0 %vm525_vm2, %v1459_v6  ;;  %2223 = vmatmul.msk.bf16.vlgmr.msra.gmra.mxu1 %vm525_vm2, %v1459_v6 }
 0x4e6   : > { %2224 = vmatmul.msk.bf16.vlgmr.msra.gmra.mxu2 %vm525_vm2, %v1459_v6  ;;  %2225 = vmatmul.msk.bf16.vlgmr.msra.gmra.mxu3 %vm525_vm2, %v1459_v6 }
 0x4e7   : > { %1629 = vmatpush.bf16.msrb.mxu0 %v2820_v28  ;;  %1643 = vmatpush.bf16.msrb.mxu1 %v2824_v34 }
 0x4e8   : > { %1657 = vmatpush.bf16.msrb.mxu2 %v2776_v47  ;;  %1671 = vmatpush.bf16.msrb.mxu3 %v2779_v50 }
 0x4eb   : > { %1630 = vmatpush.bf16.msrb.mxu0 %v2827_v39  ;;  %1644 = vmatpush.bf16.msrb.mxu1 %v2831_v43 }
 0x4ec   : > { %1658 = vmatpush.bf16.msrb.mxu2 %v2788_v59  ;;  %1672 = vmatpush.bf16.msrb.mxu3 %v2791_v62 }
 0x4ef   : > { %1631 = vmatpush.bf16.msrb.mxu0 %v2835_v48  ;;  %1645 = vmatpush.bf16.msrb.mxu1 %v2837_v51 }
 0x4f0   : > { %1659 = vmatpush.bf16.msrb.mxu2 %v2800_v5  ;;  %1673 = vmatpush.bf16.msrb.mxu3 %v2803_v10 }
 0x4f3   : > { %1632 = vmatpush.bf16.msrb.mxu0 %v2843_v63  ;;  %1646 = vmatpush.bf16.msrb.mxu1 %v2845_v2 }
 0x4f4   : > { %1660 = vmatpush.bf16.msrb.mxu2 %v2808_v18  ;;  %1674 = vmatpush.bf16.msrb.mxu3 %v3305_v9 }
 0x4f7   : > { %1691 = vmatpush.bf16.msra.mxu0 %v3306_v12  ;;  %1705 = vmatpush.bf16.msra.mxu1 %v3307_v15 }
 0x4f8   : > { %1719 = vmatpush.bf16.msra.mxu2 %v3308_v19  ;;  %1733 = vmatpush.bf16.msra.mxu3 %v3309_v22 }
 0x552   : > { %v1469_v29 = vpop.f32.mrf.mxu0  ;;  %v1483_v35 = vpop.f32.mrf.mxu1 }
 0x559   : > { %v1497_v41 = vpop.f32.mrf.mxu2  ;;  %v1511_v42 = vpop.f32.mrf.mxu3 }
 0x55a   : > { %v1471_v47 = vpop.f32.mrf.mxu0  ;;  %v1485_v50 = vpop.f32.mrf.mxu1 }
 0x561   : > { %v1499_v53 = vpop.f32.mrf.mxu2  ;;  %v1513_v54 = vpop.f32.mrf.mxu3 }
 0x562   : > { %v1528_v59 = vpop.f32.mrf.mxu0  ;;  %v1542_v62 = vpop.f32.mrf.mxu1 }
 0x563   : > { %v1529_v3 = vadd.f32 %v1528_v59, %v1469_v29  ;;  %v1543_v4 = vadd.f32 %v1542_v62, %v1483_v35  ;;  %v1614_v29 = vpop.permute.xlu1 %1613  ;;  %v2338_v59 = vld [vmem:[#allocation4 + $0x20] sm:$0xff] }
 0x564   : > { %vm1618_vm0 = vcmp.eq.s32.totalorder %v2865_v0, %v1614_v29 }
 0x565   : > { %v1575_v5 = vmul.f32 0.5, %v1529_v3  ;;  %v1583_v10 = vmul.f32 0.5, %v1543_v4  ;;  %v2337_v3 = vld [vmem:[#allocation4 + $0x18] sm:$0xff] }
 0x567   : > { %2526 = vtanh.f32 %v1575_v5 }
 0x568   : > { %2528 = vtanh.f32 %v1583_v10  ;;  %v2336_v10 = vld [vmem:[#allocation4 + $0x10] sm:$0xff] }
 0x569   : > { %v1556_v18 = vpop.f32.mrf.mxu2  ;;  %v1570_v28 = vpop.f32.mrf.mxu3 }
 0x56a   : > { %v1557_v34 = vadd.f32 %v1556_v18, %v1497_v41  ;;  %v1530_v39 = vpop.f32.mrf.mxu0  ;;  %v1544_v43 = vpop.f32.mrf.mxu1  ;;  %v1571_v45 = vadd.f32 %v1570_v28, %v1511_v42  ;;  %v2226_v41 = vsel %vm1618_vm0, 1.0, %v3285_v8 }
 0x56b   : > { %v1531_v48 = vadd.f32 %v1530_v39, %v1471_v47  ;;  %v1545_v51 = vadd.f32 %v1544_v43, %v1485_v50  ;;  %v2341_v47 = vld [vmem:[#allocation4 + $0x38] sm:$0xff]  ;;  %v2340_v50 = vld [vmem:[#allocation4 + $0x30] sm:$0xff] }
 0x56c   : > { %2530 = vtanh.f32 %v1557_v34  ;;  %v1593_v24 = vmul.f32 0.5, %v1571_v45  ;;  %v2335_v34 = vld [vmem:[#allocation4 + $0x8] sm:$0xff] }
 0x56d   : > { %v2527_v63 = vpop.eup %2526  ;;  %v1576_v2 = vmul.f32 0.5, %v1531_v48  ;;  %v1584_v31 = vmul.f32 0.5, %v1545_v51 }
 0x56e   : > { %v2529_v14 = vpop.eup %2528  ;;  %v1579_v37 = vadd.f32 1.0, %v2527_v63 }
 0x56f   : > { %v1587_v27 = vadd.f32 1.0, %v2529_v14  ;;  %2532 = vtanh.f32 %v1576_v2 }
 0x570   : > { %2534 = vtanh.f32 %v1584_v31  ;;  %v1581_v55 = vmul.f32 0.5, %v1579_v37  ;;  %v2334_v31 = vld [vmem:[#allocation4] sm:$0xff] }
 0x571   : > { %v1589_v61 = vmul.f32 0.5, %v1587_v27  ;;  %v1558_v16 = vpop.f32.mrf.mxu2  ;;  %v1572_v40 = vpop.f32.mrf.mxu3 }
 0x572   : > { %v2531_v57 = vpop.eup %2530  ;;  %v1559_v17 = vadd.f32 %v1558_v16, %v1499_v53  ;;  %v1573_v7 = vadd.f32 %v1572_v40, %v1513_v54  ;;  %v2339_v53 = vld [vmem:[#allocation4 + $0x28] sm:$0xff] }
 0x573   : > { %v1601_v58 = vmul.f32 %v1589_v61, %v3178_v46  ;;  %v1603_v21 = vmul.f32 %v2531_v57, %v1581_v55  ;;  %v2349_v61 = vld [vmem:[#allocation4 + $0x78] sm:$0xff]  ;;  %v2348_v57 = vld [vmem:[#allocation4 + $0x70] sm:$0xff] }
 0x574   : > { %2536 = vtanh.f32 %v1559_v17  ;;  %v1594_v26 = vmul.f32 0.5, %v1573_v7 }
 0x575   : > { %v2533_v13 = vpop.eup %2532  ;;  %2538 = vtanh.f32 %v1593_v24  ;;  %v3232_v25 = vadd.f32 %v1603_v21, %v1601_v58 }
 0x576   : > { %v2535_v44 = vpop.eup %2534  ;;  %v1580_v11 = vadd.f32 1.0, %v2533_v13  ;;  %2540 = vtanh.f32 %v1594_v26 }
 0x577   : > { %v1588_v1 = vadd.f32 1.0, %v2535_v44  ;;  %2542 = vtanh.f32 %v3232_v25  ;;  %v2347_v44 = vld [vmem:[#allocation4 + $0x68] sm:$0xff] }
 0x578   : > { %v1582_v60 = vmul.f32 0.5, %v1580_v11 }
 0x579   : > { %v1590_v52 = vmul.f32 0.5, %v1588_v1 }
 0x57a   : > { %v2537_v38 = vpop.eup %2536 }
 0x57b   : > { %v1602_v30 = vmul.f32 %v1590_v52, %v3182_v23  ;;  %v1604_v49 = vmul.f32 %v2537_v38, %v1582_v60  ;;  %v2539_v36 = vpop.eup %2538  ;;  %v1617_v23 = vpop.permute.xlu2 %1616 }
 0x57c   : > { %v2541_v56 = vpop.eup %2540  ;;  %v1597_v46 = vadd.f32 1.0, %v2539_v36  ;;  %vm1619_vm15 = vcmp.eq.s32.totalorder %v2865_v0, %v1617_v23 }
 0x57d   : > { %v3236_v20 = vadd.f32 %v1604_v49, %v1602_v30  ;;  %v1598_v32 = vadd.f32 1.0, %v2541_v56  ;;  %v2543_v33 = vpop.eup %2542  ;;  %v2227_v35 = vsel %vm1619_vm15, 1.0, %v3285_v8 }
 0x57e   : > { %v1599_v6 = vmul.f32 0.5, %v1597_v46  ;;  %v1624_v42 = vpack.c.bf16 %v2227_v35, %v2226_v41  ;;  %v2346_v46 = vld [vmem:[#allocation4 + $0x60] sm:$0xff] }
 0x57f   : > { %2544 = vtanh.f32 %v3236_v20  ;;  %v1600_v9 = vmul.f32 0.5, %v1598_v32 }
 0x580   : > { %v1609_v15 = vmul.f32 %v2543_v33, %v1599_v6 }
 0x585   : > { %v2545_v12 = vpop.eup %2544 }
 0x586   : > { %v1610_v19 = vmul.f32 %v2545_v12, %v1600_v9 }
 0x588   : > { %v1611_v22 = vpack.c.bf16 %v1610_v19, %v1609_v15 }
 0x58a   : > { %1633 = vmatmul.bf16.vlgmr.msrb.gmra.mxu0 %v1611_v22  ;;  %1647 = vmatmul.bf16.vlgmr.msrb.gmra.mxu1 %v1611_v22 }
 0x58b   : > { %1661 = vmatmul.bf16.vlgmr.msrb.gmra.mxu2 %v1611_v22  ;;  %1675 = vmatmul.bf16.vlgmr.msrb.gmra.mxu3 %v1611_v22 }
 0x58c   : > { %1843 = vmatpush.bf16.msrb.mxu0 %v2341_v47  ;;  %1925 = vmatpush.bf16.msrb.mxu1 %v2349_v61 }
 0x590   : > { %1844 = vmatpush.bf16.msrb.mxu0 %v2340_v50  ;;  %1926 = vmatpush.bf16.msrb.mxu1 %v2348_v57 }
 0x594   : > { %1845 = vmatpush.bf16.msrb.mxu0 %v2339_v53  ;;  %1927 = vmatpush.bf16.msrb.mxu1 %v2347_v44 }
 0x598   : > { %1846 = vmatpush.bf16.msrb.mxu0 %v2338_v59  ;;  %1928 = vmatpush.bf16.msrb.mxu1 %v2346_v46 }
 0x59a   : > { %2228 = vmatmul.msk.bf16.vlgmr.msra.gmra.mxu0 %vm525_vm2, %v1624_v42  ;;  %2229 = vmatmul.msk.bf16.vlgmr.msra.gmra.mxu1 %vm525_vm2, %v1624_v42 }
 0x59b   : > { %2230 = vmatmul.msk.bf16.vlgmr.msra.gmra.mxu2 %vm525_vm2, %v1624_v42  ;;  %2231 = vmatmul.msk.bf16.vlgmr.msra.gmra.mxu3 %vm525_vm2, %v1624_v42 }
 0x59c   : > { %1847 = vmatpush.bf16.msrb.mxu0 %v2337_v3 }
 0x5a0   : > { %1848 = vmatpush.bf16.msrb.mxu0 %v2336_v10  ;;  %v2344_v10 = vld [vmem:[#allocation4 + $0x50] sm:$0xff] }
 0x5a4   : > { %1849 = vmatpush.bf16.msrb.mxu0 %v2335_v34 }
 0x5a8   : > { %1850 = vmatpush.bf16.msrb.mxu0 %v2334_v31 }
 0x607   : > { %v1634_v54 = vpop.f32.mrf.mxu0  ;;  %v1648_v0 = vpop.f32.mrf.mxu1 }
 0x60e   : > { %v1662_v8 = vpop.f32.mrf.mxu2  ;;  %v1676_v62 = vpop.f32.mrf.mxu3 }
 0x60f   : > { %v1636_v4 = vpop.f32.mrf.mxu0  ;;  %v1650_v5 = vpop.f32.mrf.mxu1 }
 0x616   : > { %v1664_v18 = vpop.f32.mrf.mxu2  ;;  %v1678_v28 = vpop.f32.mrf.mxu3 }
 0x617   : > { %v1693_v39 = vpop.f32.mrf.mxu0  ;;  %v1707_v43 = vpop.f32.mrf.mxu1 }
 0x618   : > { %v1694_v48 = vadd.f32 %v1693_v39, %v1634_v54  ;;  %v1708_v51 = vadd.f32 %v1707_v43, %v1648_v0 }
 0x61a   : > { %v1740_v63 = vmul.f32 0.5, %v1694_v48  ;;  %v1748_v2 = vmul.f32 0.5, %v1708_v51 }
 0x61c   : > { %2546 = vtanh.f32 %v1740_v63 }
 0x61d   : > { %2548 = vtanh.f32 %v1748_v2 }
 0x61e   : > { %v1721_v14 = vpop.f32.mrf.mxu2  ;;  %v1735_v37 = vpop.f32.mrf.mxu3 }
 0x61f   : > { %v1722_v45 = vadd.f32 %v1721_v14, %v1662_v8  ;;  %v1695_v27 = vpop.f32.mrf.mxu0  ;;  %v1709_v55 = vpop.f32.mrf.mxu1  ;;  %v1736_v58 = vadd.f32 %v1735_v37, %v1676_v62 }
 0x620   : > { %v1696_v16 = vadd.f32 %v1695_v27, %v1636_v4  ;;  %v1710_v40 = vadd.f32 %v1709_v55, %v1650_v5  ;;  %v2345_v5 = vld [vmem:[#allocation4 + $0x58] sm:$0xff] }
 0x621   : > { %2550 = vtanh.f32 %v1722_v45  ;;  %v1758_v30 = vmul.f32 0.5, %v1736_v58  ;;  %1929 = vmatpush.bf16.msrb.mxu1 %v2345_v5 }
 0x622   : > { %v2547_v24 = vpop.eup %2546  ;;  %v1741_v17 = vmul.f32 0.5, %v1696_v16  ;;  %v1749_v7 = vmul.f32 0.5, %v1710_v40 }
 0x623   : > { %v2549_v26 = vpop.eup %2548  ;;  %v1744_v13 = vadd.f32 1.0, %v2547_v24 }
 0x624   : > { %v1752_v21 = vadd.f32 1.0, %v2549_v26  ;;  %2552 = vtanh.f32 %v1741_v17 }
 0x625   : > { %2554 = vtanh.f32 %v1749_v7  ;;  %v1746_v11 = vmul.f32 0.5, %v1744_v13  ;;  %1930 = vmatpush.bf16.msrb.mxu1 %v2344_v10 }
 0x626   : > { %v1754_v1 = vmul.f32 0.5, %v1752_v21  ;;  %v1723_v60 = vpop.f32.mrf.mxu2  ;;  %v1737_v52 = vpop.f32.mrf.mxu3 }
 0x627   : > { %v2551_v38 = vpop.eup %2550  ;;  %v1724_v49 = vadd.f32 %v1723_v60, %v1664_v18  ;;  %v1738_v36 = vadd.f32 %v1737_v52, %v1678_v28  ;;  %v2342_v18 = vld [vmem:[#allocation4 + $0x40] sm:$0xff] }
 0x628   : > { %v1766_v33 = vmul.f32 %v1754_v1, %v3232_v25  ;;  %v1768_v6 = vmul.f32 %v2551_v38, %v1746_v11  ;;  %v1777_v28 = vld [vmem:[%s3263_s3] sm:$0x3] }
 0x629   : > { %2556 = vtanh.f32 %v1724_v49  ;;  %v1759_v56 = vmul.f32 0.5, %v1738_v36  ;;  %v1794_v39 = vperm.slane %v1777_v28, 0  ;;  %v1876_v14 = vperm.slane %v1777_v28, 1 }
 0x62a   : > { %v2553_v32 = vpop.eup %2552  ;;  %2558 = vtanh.f32 %v1758_v30  ;;  %v1770_v22 = vadd.f32 %v1768_v6, %v1766_v33 }
 0x62b   : > { %v2555_v9 = vpop.eup %2554  ;;  %v1745_v12 = vadd.f32 1.0, %v2553_v32  ;;  %2560 = vtanh.f32 %v1759_v56 }
 0x62c   : > { %v1753_v15 = vadd.f32 1.0, %v2555_v9  ;;  %2562 = vtanh.f32 %v1770_v22 }
 0x62d   : > { %v1747_v19 = vmul.f32 0.5, %v1745_v12 }
 0x62e   : > { %v1755_v23 = vmul.f32 0.5, %v1753_v15 }
 0x62f   : > { %v2557_v29 = vpop.eup %2556 }
 0x630   : > { %v1767_v35 = vmul.f32 %v1755_v23, %v3236_v20  ;;  %v1769_v41 = vmul.f32 %v2557_v29, %v1747_v19  ;;  %v2559_v42 = vpop.eup %2558  ;;  %v2343_v20 = vld [vmem:[#allocation4 + $0x48] sm:$0xff] }
 0x631   : > { %v2561_v47 = vpop.eup %2560  ;;  %v1762_v25 = vadd.f32 1.0, %v2559_v42  ;;  %1931 = vmatpush.bf16.msrb.mxu1 %v2343_v20 }
 0x632   : > { %v1771_v50 = vadd.f32 %v1769_v41, %v1767_v35  ;;  %v1763_v53 = vadd.f32 1.0, %v2561_v47  ;;  %v2563_v54 = vpop.eup %2562 }
 0x633   : > { %v1764_v0 = vmul.f32 0.5, %v1762_v25 }
 0x634   : > { %2564 = vtanh.f32 %v1771_v50  ;;  %v1765_v59 = vmul.f32 0.5, %v1763_v53 }
 0x635   : > { %v1774_v62 = vmul.f32 %v2563_v54, %v1764_v0  ;;  %1932 = vmatpush.bf16.msrb.mxu1 %v2342_v18 }
 0x63a   : > { %v2565_v8 = vpop.eup %2564 }
 0x63b   : > { %v1775_v3 = vmul.f32 %v2565_v8, %v1765_v59 }
 0x63d   : > { %v1776_v4 = vpack.c.bf16 %v1775_v3, %v1774_v62 }
 0x63f   : > { %1851 = vmatmul.bf16.vlgmr.msrb.gmra.mxu0 %v1776_v4 }
 0x6bc   : > { %v1852_v34 = vpop.f32.mrf.mxu0 }
 0x6bd   : > { %v1853_v43 = vadd.f32 %v1852_v34, %v1794_v39 }
 0x6bf   : > { %v1857_v63 = vmax.f32 %v1853_v43, 0.0 }
 0x6c4   : > { %v1854_v48 = vpop.f32.mrf.mxu0 }
 0x6c5   : > { %v1855_v51 = vadd.f32 %v1854_v48, %v1794_v39 }
 0x6c7   : > { %v1858_v2 = vmax.f32 %v1855_v51, 0.0 }
 0x6c9   : > { %v1859_v31 = vpack.c.bf16 %v1858_v2, %v1857_v63 }
 0x6cb   : > { %1933 = vmatmul.bf16.vlgmr.msrb.gmra.mxu1 %v1859_v31 }
 0x748   : > { %v1934_v37 = vpop.f32.mrf.mxu1 }
 0x749   : > { %v1935_v45 = vadd.f32 %v1934_v37, %v1876_v14 }
 0x74b   : > { %v1939_v27 = vmul.f32 0.5, %v1935_v45 }
 0x74d   : > { %2566 = vtanh.f32 %v1939_v27 }
 0x750   : > { %v1936_v55 = vpop.f32.mrf.mxu1 }
 0x751   : > { %v1937_v61 = vadd.f32 %v1936_v55, %v1876_v14 }
 0x753   : > { %v2567_v16 = vpop.eup %2566  ;;  %v1940_v40 = vmul.f32 0.5, %v1937_v61 }
 0x754   : > { %v1943_v57 = vadd.f32 1.0, %v2567_v16 }
 0x755   : > { %2568 = vtanh.f32 %v1940_v40 }
 0x756   : > { %v1945_v24 = vmul.f32 0.5, %v1943_v57 }
 0x758   : > { %1947 = vst [vmem:[%s233_s17] sm:$0xff] %v1945_v24 }
 0x75b   : > { %v2569_v17 = vpop.eup %2568 }
 0x75c   : > { %v1944_v7 = vadd.f32 1.0, %v2569_v17 }
 0x75e   : > { %v1946_v26 = vmul.f32 0.5, %v1944_v7 }
 0x760   : > { %1948 = vst [vmem:[%s233_s17 + $0x8] sm:$0xff] %v1946_v26 }
 0x761 PF: > { %s16_s15 = sadd.s32 1, %s2646_s15  }
 0x762   : > { %p13_p7 = scmp.ge.s32.totalorder %s16_s15, 4  }
 0x764   :  { %15 = sbr.rel (!%p13_p7) target bundleno = 2 (0x2), region = 75 }
 0x769   :  { %1971 = vsyncpa [#allocation3], 1 }
 0x76a   :  { %1973 = vsyncpa [#allocation3 + $0x1], 1 }
 0x76b   :  { %1974 = vsyncpa [#allocation5], 1 }

</bundles_post_ra>
